<compile_context>
chip_gen: v6e
topology: v6e:2x2x1
jax: 0.10.0
libtpu: 0.0.40
codegen_flags: <defaults>
</compile_context>

<pallas_src>
import jax
import jax.numpy as jnp
from jax.experimental import pallas as pl
from jax.experimental.pallas import tpu as pltpu


def lstm_env_kernel(s_ref, a_ref, wih_s_ref, wih_a_ref, b_ref, whh_ref,
                    whead_ref, bhead_ref, out_ref, xproj_ref):
    # s_ref:     (T, tB, S)  f32  time-major state tile
    # a_ref:     (T, tB, A)  f32  time-major action tile
    # wih_s_ref: (S, 4H)     f32  input->gates weight, state part   (transposed)
    # wih_a_ref: (A, 4H)     f32  input->gates weight, action part  (transposed)
    # b_ref:     (1, 4H)     f32  b_ih + b_hh
    # whh_ref:   (H, 4H)     f32  hidden->gates weight (transposed)
    # whead_ref: (H, Wp)     f32  fused [reward | next_state | 0-pad] head weight
    # bhead_ref: (1, Wp)     f32  fused head bias
    # out_ref:   (tB, Wp)    f32  fused lane-dense output tile
    # xproj_ref: (T, tB, 4H) f32  VMEM scratch for the non-serial input projection
    T, tB, _ = s_ref.shape
    H = whh_ref.shape[0]

    bias = b_ref[...]                                      # (1, 4H), tiny

    # --- non-serial preamble: input projection for all T steps (no dependence on h,
    #     so these MXU pushes can overlap the serial recurrence chain below). ---
    for t in range(T):
        xproj_ref[t] = (
            jnp.dot(s_ref[t], wih_s_ref[...], preferred_element_type=jnp.float32)
            + jnp.dot(a_ref[t], wih_a_ref[...], preferred_element_type=jnp.float32)
            + bias
        )

    # sigmoid via tanh: 1 EUP op + 2 VPU ops per gate (vs exp + reciprocal).
    def sig(v):
        return 0.5 * jnp.tanh(0.5 * v) + 0.5

    h = jnp.zeros((tB, H), jnp.float32)
    c = jnp.zeros((tB, H), jnp.float32)

    # Serial part: only the (tB,H) @ (H,4H) recurrence.  T=5 and static -> unrolled.
    for t in range(T):
        gates = xproj_ref[t] + jnp.dot(
            h, whh_ref[...], preferred_element_type=jnp.float32
        )                                                  # (tB, 4H) f32
        i_g = sig(gates[:, 0 * H:1 * H])
        f_g = sig(gates[:, 1 * H:2 * H])
        g_g = jnp.tanh(gates[:, 2 * H:3 * H])
        o_g = sig(gates[:, 3 * H:4 * H])
        c = f_g * c + i_g * g_g
        h = o_g * jnp.tanh(c)

    # Single fused head matmul -> one unmasked, lane-dense 128-wide store.
    out_ref[...] = (
        jnp.dot(h, whead_ref[...], preferred_element_type=jnp.float32)
        + bhead_ref[...]
    )


def init_params(key, state_dim, action_dim, hidden_dim=128):
    """Deterministic PyTorch-style uniform(-1/sqrt(H), 1/sqrt(H)) init (f32)."""
    D = state_dim + action_dim
    bound = 1.0 / float(hidden_dim) ** 0.5
    keys = jax.random.split(key, 8)
    u = lambda kk, shp: jax.random.uniform(kk, shp, jnp.float32, -bound, bound)

    w_ih = u(keys[0], (4 * hidden_dim, D))           # nn.LSTM weight_ih_l0
    w_hh = u(keys[1], (4 * hidden_dim, hidden_dim))  # nn.LSTM weight_hh_l0
    b_ih = u(keys[2], (4 * hidden_dim,))
    b_hh = u(keys[3], (4 * hidden_dim,))
    w_r = u(keys[4], (1, hidden_dim))                # fc_reward
    b_r = u(keys[5], (1,))
    w_s = u(keys[6], (state_dim, hidden_dim))        # fc_state
    b_s = u(keys[7], (state_dim,))

    return dict(
        w_ih_t=w_ih.T,                    # (D, 4H)
        w_hh_t=w_hh.T,                    # (H, 4H)
        b=(b_ih + b_hh)[None, :],         # (1, 4H)
        w_r_t=w_r.T,                      # (H, 1)
        b_r=b_r[None, :],                 # (1, 1)
        w_s_t=w_s.T,                      # (H, S)
        b_s=b_s[None, :],                 # (1, S)
    )


def multi_task_lstm_env_model(state_seq, action_seq, params):
    """state_seq: (B, T, S), action_seq: (B, T, A) -> (reward (B,1), next_state (B,S))."""
    B, T, S = state_seq.shape
    A = action_seq.shape[2]
    H = params["w_hh_t"].shape[0]
    S_out = params["w_s_t"].shape[1]

    # --- batch padding / tiling: pad to f32 sublane multiple (8); tile at <=256 rows so a
    #     double-buffered tile stays small even on v7x's 64 MiB/TC VMEM. ---
    Bp = max(8, -(-B // 8) * 8)
    tB = min(Bp, 256)
    Bp = -(-Bp // tB) * tB
    n_tiles = Bp // tB

    # --- time-major inputs (zero-padded batch rows stay exactly zero) ---
    s_tm = jnp.transpose(state_seq, (1, 0, 2)).astype(jnp.float32)    # (T, B, S)
    a_tm = jnp.transpose(action_seq, (1, 0, 2)).astype(jnp.float32)   # (T, B, A)
    if Bp != B:
        s_tm = jnp.pad(s_tm, ((0, 0), (0, Bp - B), (0, 0)))
        a_tm = jnp.pad(a_tm, ((0, 0), (0, Bp - B), (0, 0)))

    # --- split input weight by source (avoids any concat HBM round trip) ---
    w_ih_s = params["w_ih_t"][:S]                     # (S, 4H) f32
    w_ih_a = params["w_ih_t"][S:]                     # (A, 4H) f32

    # --- fuse the two heads into one lane-dense (H, 128k) weight / bias ---
    Wp = -(-(S_out + 1) // 128) * 128
    w_head = jnp.concatenate([params["w_r_t"], params["w_s_t"]], axis=1)  # (H, 1+S)
    w_head = jnp.pad(w_head, ((0, 0), (0, Wp - (S_out + 1))))
    b_head = jnp.concatenate([params["b_r"], params["b_s"]], axis=1)      # (1, 1+S)
    b_head = jnp.pad(b_head, ((0, 0), (0, Wp - (S_out + 1))))

    # --- cost hint so XLA can schedule around the (tiny) custom call ---
    flops = (2 * T * Bp * (S + A) * 4 * H          # input projection
             + 2 * T * Bp * H * 4 * H              # recurrence
             + 2 * Bp * H * Wp)                    # fused heads
    transcendentals = 5 * T * Bp * H               # 4 gate tanh + tanh(c) per step
    bytes_accessed = 4 * (T * Bp * (S + A) + (S + A) * 4 * H + 4 * H
                          + H * 4 * H + H * Wp + Wp + Bp * Wp)

    out = pl.pallas_call(
        lstm_env_kernel,
        out_shape=jax.ShapeDtypeStruct((Bp, Wp), jnp.float32),
        grid=(n_tiles,),
        in_specs=[
            pl.BlockSpec((T, tB, S), lambda i: (0, i, 0)),
            pl.BlockSpec((T, tB, A), lambda i: (0, i, 0)),
            pl.BlockSpec((S, 4 * H), lambda i: (0, 0)),
            pl.BlockSpec((A, 4 * H), lambda i: (0, 0)),
            pl.BlockSpec((1, 4 * H), lambda i: (0, 0)),
            pl.BlockSpec((H, 4 * H), lambda i: (0, 0)),
            pl.BlockSpec((H, Wp), lambda i: (0, 0)),
            pl.BlockSpec((1, Wp), lambda i: (0, 0)),
        ],
        out_specs=pl.BlockSpec((tB, Wp), lambda i: (i, 0)),
        scratch_shapes=[pltpu.VMEM((T, tB, 4 * H), jnp.float32)],
        compiler_params=pltpu.CompilerParams(dimension_semantics=("parallel",)),
        cost_estimate=pl.CostEstimate(
            flops=flops,
            transcendentals=transcendentals,
            bytes_accessed=bytes_accessed,
        ),
    )(s_tm, a_tm, w_ih_s, w_ih_a, params["b"], params["w_hh_t"], w_head, b_head)

    # Padded batch rows of `out` contain the head bias (not zeros); they are sliced off here.
    reward = out[:B, 0:1]
    next_state = out[:B, 1:1 + S_out]
    return reward, next_state


def reference_forward(state_seq, action_seq, params):
    """Pure-JAX f32 reference mirroring torch semantics, for validation."""
    x = jnp.concatenate([state_seq, action_seq], axis=-1).astype(jnp.float32)
    B, T, _ = x.shape
    H = params["w_hh_t"].shape[0]
    h = jnp.zeros((B, H), jnp.float32)
    c = jnp.zeros((B, H), jnp.float32)
    for t in range(T):
        gates = x[:, t] @ params["w_ih_t"] + h @ params["w_hh_t"] + params["b"]
        i_g = jax.nn.sigmoid(gates[:, 0 * H:1 * H])
        f_g = jax.nn.sigmoid(gates[:, 1 * H:2 * H])
        g_g = jnp.tanh(gates[:, 2 * H:3 * H])
        o_g = jax.nn.sigmoid(gates[:, 3 * H:4 * H])
        c = f_g * c + i_g * g_g
        h = o_g * jnp.tanh(c)
    reward = h @ params["w_r_t"] + params["b_r"]
    next_state = h @ params["w_s_t"] + params["b_s"]
    return reward, next_state


if __name__ == "__main__":
    B = 2
    seq_len = 5
    state_dim = 45
    action_dim = 45
    hidden_dim = 128

    root = jax.random.PRNGKey(0)
    k_params, k_state, k_action = jax.random.split(root, 3)

    params = init_params(k_params, state_dim, action_dim, hidden_dim)
    state_seq = jax.random.normal(k_state, (B, seq_len, state_dim), jnp.float32)
    action_seq = jax.random.normal(k_action, (B, seq_len, action_dim), jnp.float32)

    reward, next_state = jax.jit(multi_task_lstm_env_model)(state_seq, action_seq, params)
    jax.block_until_ready((reward, next_state))

    r_ref, s_ref = reference_forward(state_seq, action_seq, params)
    assert reward.shape == (B, 1) and next_state.shape == (B, state_dim)
    # Full-f32 kernel path -> much tighter agreement than the previous bf16 recurrence
    # (tolerance covers default-precision XLA matmuls in the reference).
    assert jnp.allclose(reward, r_ref, atol=1e-2, rtol=1e-2)
    assert jnp.allclose(next_state, s_ref, atol=1e-2, rtol=1e-2)

    print("KERNEL_OK")
</pallas_src>

<mosaic_0001>
module attributes {stable_mosaic.version = 11 : i64} {
  func.func @lstm_env_kernel(%arg0: i32, %arg1: memref<5x8x45xf32, #tpu.memory_space<vmem>>, %arg2: memref<5x8x45xf32, #tpu.memory_space<vmem>>, %arg3: memref<45x512xf32, #tpu.memory_space<vmem>>, %arg4: memref<45x512xf32, #tpu.memory_space<vmem>>, %arg5: memref<1x512xf32, #tpu.memory_space<vmem>>, %arg6: memref<128x512xf32, #tpu.memory_space<vmem>>, %arg7: memref<128x128xf32, #tpu.memory_space<vmem>>, %arg8: memref<1x128xf32, #tpu.memory_space<vmem>>, %arg9: memref<8x128xf32, #tpu.memory_space<vmem>>, %arg10: memref<5x8x512xf32, #tpu.memory_space<vmem>>) attributes {dimension_semantics = [#tpu.dimension_semantics<parallel>], iteration_bounds = array<i64: 1>, scalar_prefetch = 0 : i64, scratch_operands = 1 : i64, tpu.core_type = #tpu.core_type<tc>, window_params = [{transform_indices = @transform_0, window_bounds = array<i64: 5, 8, 45>}, {transform_indices = @transform_1, window_bounds = array<i64: 5, 8, 45>}, {pipeline_mode = #tpu.pipeline_mode<synchronous>, transform_indices = @transform_2, window_bounds = array<i64: 45, 512>}, {pipeline_mode = #tpu.pipeline_mode<synchronous>, transform_indices = @transform_3, window_bounds = array<i64: 45, 512>}, {pipeline_mode = #tpu.pipeline_mode<synchronous>, transform_indices = @transform_4, window_bounds = array<i64: 1, 512>}, {pipeline_mode = #tpu.pipeline_mode<synchronous>, transform_indices = @transform_5, window_bounds = array<i64: 128, 512>}, {pipeline_mode = #tpu.pipeline_mode<synchronous>, transform_indices = @transform_6, window_bounds = array<i64: 128, 128>}, {pipeline_mode = #tpu.pipeline_mode<synchronous>, transform_indices = @transform_7, window_bounds = array<i64: 1, 128>}, {transform_indices = @transform_8, window_bounds = array<i64: 8, 128>}]} {
    %c0 = arith.constant 0 : index
    %c0_0 = arith.constant 0 : index
    %0 = vector.load %arg5[%c0, %c0_0] : memref<1x512xf32, #tpu.memory_space<vmem>>, vector<1x512xf32>
    %c0_1 = arith.constant 0 : index
    %c0_2 = arith.constant 0 : index
    %c0_3 = arith.constant 0 : index
    %1 = vector.load %arg1[%c0_1, %c0_2, %c0_3] : memref<5x8x45xf32, #tpu.memory_space<vmem>>, vector<1x8x45xf32>
    %2 = vector.shape_cast %1 : vector<1x8x45xf32> to vector<8x45xf32>
    %c0_4 = arith.constant 0 : index
    %c0_5 = arith.constant 0 : index
    %3 = vector.load %arg3[%c0_4, %c0_5] : memref<45x512xf32, #tpu.memory_space<vmem>>, vector<45x512xf32>
    %cst = arith.constant dense<0.000000e+00> : vector<8x512xf32>
    %4 = tpu.matmul %2, %3, %cst {dimension_numbers = #tpu.dot_dimension_numbers<[1], [0], [0], [1], [0, 0, 1, 1], [], []>} : vector<8x45xf32>, vector<45x512xf32>, vector<8x512xf32> -> vector<8x512xf32>
    %c0_6 = arith.constant 0 : index
    %c0_7 = arith.constant 0 : index
    %c0_8 = arith.constant 0 : index
    %5 = vector.load %arg2[%c0_6, %c0_7, %c0_8] : memref<5x8x45xf32, #tpu.memory_space<vmem>>, vector<1x8x45xf32>
    %6 = vector.shape_cast %5 : vector<1x8x45xf32> to vector<8x45xf32>
    %c0_9 = arith.constant 0 : index
    %c0_10 = arith.constant 0 : index
    %7 = vector.load %arg4[%c0_9, %c0_10] : memref<45x512xf32, #tpu.memory_space<vmem>>, vector<45x512xf32>
    %cst_11 = arith.constant dense<0.000000e+00> : vector<8x512xf32>
    %8 = tpu.matmul %6, %7, %cst_11 {dimension_numbers = #tpu.dot_dimension_numbers<[1], [0], [0], [1], [0, 0, 1, 1], [], []>} : vector<8x45xf32>, vector<45x512xf32>, vector<8x512xf32> -> vector<8x512xf32>
    %9 = arith.addf %4, %8 : vector<8x512xf32>
    %10 = vector.broadcast %0 : vector<1x512xf32> to vector<8x512xf32>
    %11 = arith.addf %9, %10 : vector<8x512xf32>
    %c0_12 = arith.constant 0 : index
    %c0_13 = arith.constant 0 : index
    %c0_14 = arith.constant 0 : index
    %12 = vector.load %arg10[%c0_12, %c0_13, %c0_14] : memref<5x8x512xf32, #tpu.memory_space<vmem>>, vector<1x8x512xf32>
    %13 = vector.shape_cast %12 : vector<1x8x512xf32> to vector<8x512xf32>
    %14 = vector.shape_cast %11 : vector<8x512xf32> to vector<1x8x512xf32>
    tpu.vector_store %arg10[%c0_12, %c0_13, %c0_14], %14 {strides = array<i32>} : memref<5x8x512xf32, #tpu.memory_space<vmem>>, vector<1x8x512xf32>,
    %c1 = arith.constant 1 : index
    %c0_15 = arith.constant 0 : index
    %c0_16 = arith.constant 0 : index
    %15 = vector.load %arg1[%c1, %c0_15, %c0_16] : memref<5x8x45xf32, #tpu.memory_space<vmem>>, vector<1x8x45xf32>
    %16 = vector.shape_cast %15 : vector<1x8x45xf32> to vector<8x45xf32>
    %c0_17 = arith.constant 0 : index
    %c0_18 = arith.constant 0 : index
    %17 = vector.load %arg3[%c0_17, %c0_18] : memref<45x512xf32, #tpu.memory_space<vmem>>, vector<45x512xf32>
    %cst_19 = arith.constant dense<0.000000e+00> : vector<8x512xf32>
    %18 = tpu.matmul %16, %17, %cst_19 {dimension_numbers = #tpu.dot_dimension_numbers<[1], [0], [0], [1], [0, 0, 1, 1], [], []>} : vector<8x45xf32>, vector<45x512xf32>, vector<8x512xf32> -> vector<8x512xf32>
    %c1_20 = arith.constant 1 : index
    %c0_21 = arith.constant 0 : index
    %c0_22 = arith.constant 0 : index
    %19 = vector.load %arg2[%c1_20, %c0_21, %c0_22] : memref<5x8x45xf32, #tpu.memory_space<vmem>>, vector<1x8x45xf32>
    %20 = vector.shape_cast %19 : vector<1x8x45xf32> to vector<8x45xf32>
    %c0_23 = arith.constant 0 : index
    %c0_24 = arith.constant 0 : index
    %21 = vector.load %arg4[%c0_23, %c0_24] : memref<45x512xf32, #tpu.memory_space<vmem>>, vector<45x512xf32>
    %cst_25 = arith.constant dense<0.000000e+00> : vector<8x512xf32>
    %22 = tpu.matmul %20, %21, %cst_25 {dimension_numbers = #tpu.dot_dimension_numbers<[1], [0], [0], [1], [0, 0, 1, 1], [], []>} : vector<8x45xf32>, vector<45x512xf32>, vector<8x512xf32> -> vector<8x512xf32>
    %23 = arith.addf %18, %22 : vector<8x512xf32>
    %24 = vector.broadcast %0 : vector<1x512xf32> to vector<8x512xf32>
    %25 = arith.addf %23, %24 : vector<8x512xf32>
    %c1_26 = arith.constant 1 : index
    %c0_27 = arith.constant 0 : index
    %c0_28 = arith.constant 0 : index
    %26 = vector.load %arg10[%c1_26, %c0_27, %c0_28] : memref<5x8x512xf32, #tpu.memory_space<vmem>>, vector<1x8x512xf32>
    %27 = vector.shape_cast %26 : vector<1x8x512xf32> to vector<8x512xf32>
    %28 = vector.shape_cast %25 : vector<8x512xf32> to vector<1x8x512xf32>
    tpu.vector_store %arg10[%c1_26, %c0_27, %c0_28], %28 {strides = array<i32>} : memref<5x8x512xf32, #tpu.memory_space<vmem>>, vector<1x8x512xf32>,
    %c2 = arith.constant 2 : index
    %c0_29 = arith.constant 0 : index
    %c0_30 = arith.constant 0 : index
    %29 = vector.load %arg1[%c2, %c0_29, %c0_30] : memref<5x8x45xf32, #tpu.memory_space<vmem>>, vector<1x8x45xf32>
    %30 = vector.shape_cast %29 : vector<1x8x45xf32> to vector<8x45xf32>
    %c0_31 = arith.constant 0 : index
    %c0_32 = arith.constant 0 : index
    %31 = vector.load %arg3[%c0_31, %c0_32] : memref<45x512xf32, #tpu.memory_space<vmem>>, vector<45x512xf32>
    %cst_33 = arith.constant dense<0.000000e+00> : vector<8x512xf32>
    %32 = tpu.matmul %30, %31, %cst_33 {dimension_numbers = #tpu.dot_dimension_numbers<[1], [0], [0], [1], [0, 0, 1, 1], [], []>} : vector<8x45xf32>, vector<45x512xf32>, vector<8x512xf32> -> vector<8x512xf32>
    %c2_34 = arith.constant 2 : index
    %c0_35 = arith.constant 0 : index
    %c0_36 = arith.constant 0 : index
    %33 = vector.load %arg2[%c2_34, %c0_35, %c0_36] : memref<5x8x45xf32, #tpu.memory_space<vmem>>, vector<1x8x45xf32>
    %34 = vector.shape_cast %33 : vector<1x8x45xf32> to vector<8x45xf32>
    %c0_37 = arith.constant 0 : index
    %c0_38 = arith.constant 0 : index
    %35 = vector.load %arg4[%c0_37, %c0_38] : memref<45x512xf32, #tpu.memory_space<vmem>>, vector<45x512xf32>
    %cst_39 = arith.constant dense<0.000000e+00> : vector<8x512xf32>
    %36 = tpu.matmul %34, %35, %cst_39 {dimension_numbers = #tpu.dot_dimension_numbers<[1], [0], [0], [1], [0, 0, 1, 1], [], []>} : vector<8x45xf32>, vector<45x512xf32>, vector<8x512xf32> -> vector<8x512xf32>
    %37 = arith.addf %32, %36 : vector<8x512xf32>
    %38 = vector.broadcast %0 : vector<1x512xf32> to vector<8x512xf32>
    %39 = arith.addf %37, %38 : vector<8x512xf32>
    %c2_40 = arith.constant 2 : index
    %c0_41 = arith.constant 0 : index
    %c0_42 = arith.constant 0 : index
    %40 = vector.load %arg10[%c2_40, %c0_41, %c0_42] : memref<5x8x512xf32, #tpu.memory_space<vmem>>, vector<1x8x512xf32>
    %41 = vector.shape_cast %40 : vector<1x8x512xf32> to vector<8x512xf32>
    %42 = vector.shape_cast %39 : vector<8x512xf32> to vector<1x8x512xf32>
    tpu.vector_store %arg10[%c2_40, %c0_41, %c0_42], %42 {strides = array<i32>} : memref<5x8x512xf32, #tpu.memory_space<vmem>>, vector<1x8x512xf32>,
    %c3 = arith.constant 3 : index
    %c0_43 = arith.constant 0 : index
    %c0_44 = arith.constant 0 : index
    %43 = vector.load %arg1[%c3, %c0_43, %c0_44] : memref<5x8x45xf32, #tpu.memory_space<vmem>>, vector<1x8x45xf32>
    %44 = vector.shape_cast %43 : vector<1x8x45xf32> to vector<8x45xf32>
    %c0_45 = arith.constant 0 : index
    %c0_46 = arith.constant 0 : index
    %45 = vector.load %arg3[%c0_45, %c0_46] : memref<45x512xf32, #tpu.memory_space<vmem>>, vector<45x512xf32>
    %cst_47 = arith.constant dense<0.000000e+00> : vector<8x512xf32>
    %46 = tpu.matmul %44, %45, %cst_47 {dimension_numbers = #tpu.dot_dimension_numbers<[1], [0], [0], [1], [0, 0, 1, 1], [], []>} : vector<8x45xf32>, vector<45x512xf32>, vector<8x512xf32> -> vector<8x512xf32>
    %c3_48 = arith.constant 3 : index
    %c0_49 = arith.constant 0 : index
    %c0_50 = arith.constant 0 : index
    %47 = vector.load %arg2[%c3_48, %c0_49, %c0_50] : memref<5x8x45xf32, #tpu.memory_space<vmem>>, vector<1x8x45xf32>
    %48 = vector.shape_cast %47 : vector<1x8x45xf32> to vector<8x45xf32>
    %c0_51 = arith.constant 0 : index
    %c0_52 = arith.constant 0 : index
    %49 = vector.load %arg4[%c0_51, %c0_52] : memref<45x512xf32, #tpu.memory_space<vmem>>, vector<45x512xf32>
    %cst_53 = arith.constant dense<0.000000e+00> : vector<8x512xf32>
    %50 = tpu.matmul %48, %49, %cst_53 {dimension_numbers = #tpu.dot_dimension_numbers<[1], [0], [0], [1], [0, 0, 1, 1], [], []>} : vector<8x45xf32>, vector<45x512xf32>, vector<8x512xf32> -> vector<8x512xf32>
    %51 = arith.addf %46, %50 : vector<8x512xf32>
    %52 = vector.broadcast %0 : vector<1x512xf32> to vector<8x512xf32>
    %53 = arith.addf %51, %52 : vector<8x512xf32>
    %c3_54 = arith.constant 3 : index
    %c0_55 = arith.constant 0 : index
    %c0_56 = arith.constant 0 : index
    %54 = vector.load %arg10[%c3_54, %c0_55, %c0_56] : memref<5x8x512xf32, #tpu.memory_space<vmem>>, vector<1x8x512xf32>
    %55 = vector.shape_cast %54 : vector<1x8x512xf32> to vector<8x512xf32>
    %56 = vector.shape_cast %53 : vector<8x512xf32> to vector<1x8x512xf32>
    tpu.vector_store %arg10[%c3_54, %c0_55, %c0_56], %56 {strides = array<i32>} : memref<5x8x512xf32, #tpu.memory_space<vmem>>, vector<1x8x512xf32>,
    %c4 = arith.constant 4 : index
    %c0_57 = arith.constant 0 : index
    %c0_58 = arith.constant 0 : index
    %57 = vector.load %arg1[%c4, %c0_57, %c0_58] : memref<5x8x45xf32, #tpu.memory_space<vmem>>, vector<1x8x45xf32>
    %58 = vector.shape_cast %57 : vector<1x8x45xf32> to vector<8x45xf32>
    %c0_59 = arith.constant 0 : index
    %c0_60 = arith.constant 0 : index
    %59 = vector.load %arg3[%c0_59, %c0_60] : memref<45x512xf32, #tpu.memory_space<vmem>>, vector<45x512xf32>
    %cst_61 = arith.constant dense<0.000000e+00> : vector<8x512xf32>
    %60 = tpu.matmul %58, %59, %cst_61 {dimension_numbers = #tpu.dot_dimension_numbers<[1], [0], [0], [1], [0, 0, 1, 1], [], []>} : vector<8x45xf32>, vector<45x512xf32>, vector<8x512xf32> -> vector<8x512xf32>
    %c4_62 = arith.constant 4 : index
    %c0_63 = arith.constant 0 : index
    %c0_64 = arith.constant 0 : index
    %61 = vector.load %arg2[%c4_62, %c0_63, %c0_64] : memref<5x8x45xf32, #tpu.memory_space<vmem>>, vector<1x8x45xf32>
    %62 = vector.shape_cast %61 : vector<1x8x45xf32> to vector<8x45xf32>
    %c0_65 = arith.constant 0 : index
    %c0_66 = arith.constant 0 : index
    %63 = vector.load %arg4[%c0_65, %c0_66] : memref<45x512xf32, #tpu.memory_space<vmem>>, vector<45x512xf32>
    %cst_67 = arith.constant dense<0.000000e+00> : vector<8x512xf32>
    %64 = tpu.matmul %62, %63, %cst_67 {dimension_numbers = #tpu.dot_dimension_numbers<[1], [0], [0], [1], [0, 0, 1, 1], [], []>} : vector<8x45xf32>, vector<45x512xf32>, vector<8x512xf32> -> vector<8x512xf32>
    %65 = arith.addf %60, %64 : vector<8x512xf32>
    %66 = vector.broadcast %0 : vector<1x512xf32> to vector<8x512xf32>
    %67 = arith.addf %65, %66 : vector<8x512xf32>
    %c4_68 = arith.constant 4 : index
    %c0_69 = arith.constant 0 : index
    %c0_70 = arith.constant 0 : index
    %68 = vector.load %arg10[%c4_68, %c0_69, %c0_70] : memref<5x8x512xf32, #tpu.memory_space<vmem>>, vector<1x8x512xf32>
    %69 = vector.shape_cast %68 : vector<1x8x512xf32> to vector<8x512xf32>
    %70 = vector.shape_cast %67 : vector<8x512xf32> to vector<1x8x512xf32>
    tpu.vector_store %arg10[%c4_68, %c0_69, %c0_70], %70 {strides = array<i32>} : memref<5x8x512xf32, #tpu.memory_space<vmem>>, vector<1x8x512xf32>,
    %cst_71 = arith.constant 0.000000e+00 : f32
    %71 = vector.broadcast %cst_71 : f32 to vector<8x128xf32>
    %cst_72 = arith.constant 0.000000e+00 : f32
    %72 = vector.broadcast %cst_72 : f32 to vector<8x128xf32>
    %c0_73 = arith.constant 0 : index
    %c0_74 = arith.constant 0 : index
    %c0_75 = arith.constant 0 : index
    %73 = vector.load %arg10[%c0_73, %c0_74, %c0_75] : memref<5x8x512xf32, #tpu.memory_space<vmem>>, vector<1x8x512xf32>
    %74 = vector.shape_cast %73 : vector<1x8x512xf32> to vector<8x512xf32>
    %c0_76 = arith.constant 0 : index
    %c0_77 = arith.constant 0 : index
    %75 = vector.load %arg6[%c0_76, %c0_77] : memref<128x512xf32, #tpu.memory_space<vmem>>, vector<128x512xf32>
    %cst_78 = arith.constant dense<0.000000e+00> : vector<8x512xf32>
    %76 = tpu.matmul %71, %75, %cst_78 {dimension_numbers = #tpu.dot_dimension_numbers<[1], [0], [0], [1], [0, 0, 1, 1], [], []>} : vector<8x128xf32>, vector<128x512xf32>, vector<8x512xf32> -> vector<8x512xf32>
    %77 = arith.addf %74, %76 : vector<8x512xf32>
    %78 = vector.extract_strided_slice %77 {offsets = [0, 0], sizes = [8, 128], strides = [1, 1]} : vector<8x512xf32> to vector<8x128xf32>
    %cst_79 = arith.constant 5.000000e-01 : f32
    %79 = vector.broadcast %cst_79 : f32 to vector<8x128xf32>
    %80 = arith.mulf %79, %78 : vector<8x128xf32>
    %81 = math.tanh %80 : vector<8x128xf32>
    %cst_80 = arith.constant 5.000000e-01 : f32
    %82 = vector.broadcast %cst_80 : f32 to vector<8x128xf32>
    %83 = arith.mulf %82, %81 : vector<8x128xf32>
    %cst_81 = arith.constant 5.000000e-01 : f32
    %84 = vector.broadcast %cst_81 : f32 to vector<8x128xf32>
    %85 = arith.addf %83, %84 : vector<8x128xf32>
    %86 = vector.extract_strided_slice %77 {offsets = [0, 128], sizes = [8, 128], strides = [1, 1]} : vector<8x512xf32> to vector<8x128xf32>
    %cst_82 = arith.constant 5.000000e-01 : f32
    %87 = vector.broadcast %cst_82 : f32 to vector<8x128xf32>
    %88 = arith.mulf %87, %86 : vector<8x128xf32>
    %89 = math.tanh %88 : vector<8x128xf32>
    %cst_83 = arith.constant 5.000000e-01 : f32
    %90 = vector.broadcast %cst_83 : f32 to vector<8x128xf32>
    %91 = arith.mulf %90, %89 : vector<8x128xf32>
    %cst_84 = arith.constant 5.000000e-01 : f32
    %92 = vector.broadcast %cst_84 : f32 to vector<8x128xf32>
    %93 = arith.addf %91, %92 : vector<8x128xf32>
    %94 = vector.extract_strided_slice %77 {offsets = [0, 256], sizes = [8, 128], strides = [1, 1]} : vector<8x512xf32> to vector<8x128xf32>
    %95 = math.tanh %94 : vector<8x128xf32>
    %96 = vector.extract_strided_slice %77 {offsets = [0, 384], sizes = [8, 128], strides = [1, 1]} : vector<8x512xf32> to vector<8x128xf32>
    %cst_85 = arith.constant 5.000000e-01 : f32
    %97 = vector.broadcast %cst_85 : f32 to vector<8x128xf32>
    %98 = arith.mulf %97, %96 : vector<8x128xf32>
    %99 = math.tanh %98 : vector<8x128xf32>
    %cst_86 = arith.constant 5.000000e-01 : f32
    %100 = vector.broadcast %cst_86 : f32 to vector<8x128xf32>
    %101 = arith.mulf %100, %99 : vector<8x128xf32>
    %cst_87 = arith.constant 5.000000e-01 : f32
    %102 = vector.broadcast %cst_87 : f32 to vector<8x128xf32>
    %103 = arith.addf %101, %102 : vector<8x128xf32>
    %104 = arith.mulf %93, %72 : vector<8x128xf32>
    %105 = arith.mulf %85, %95 : vector<8x128xf32>
    %106 = arith.addf %104, %105 : vector<8x128xf32>
    %107 = math.tanh %106 : vector<8x128xf32>
    %108 = arith.mulf %103, %107 : vector<8x128xf32>
    %c1_88 = arith.constant 1 : index
    %c0_89 = arith.constant 0 : index
    %c0_90 = arith.constant 0 : index
    %109 = vector.load %arg10[%c1_88, %c0_89, %c0_90] : memref<5x8x512xf32, #tpu.memory_space<vmem>>, vector<1x8x512xf32>
    %110 = vector.shape_cast %109 : vector<1x8x512xf32> to vector<8x512xf32>
    %c0_91 = arith.constant 0 : index
    %c0_92 = arith.constant 0 : index
    %111 = vector.load %arg6[%c0_91, %c0_92] : memref<128x512xf32, #tpu.memory_space<vmem>>, vector<128x512xf32>
    %cst_93 = arith.constant dense<0.000000e+00> : vector<8x512xf32>
    %112 = tpu.matmul %108, %111, %cst_93 {dimension_numbers = #tpu.dot_dimension_numbers<[1], [0], [0], [1], [0, 0, 1, 1], [], []>} : vector<8x128xf32>, vector<128x512xf32>, vector<8x512xf32> -> vector<8x512xf32>
    %113 = arith.addf %110, %112 : vector<8x512xf32>
    %114 = vector.extract_strided_slice %113 {offsets = [0, 0], sizes = [8, 128], strides = [1, 1]} : vector<8x512xf32> to vector<8x128xf32>
    %cst_94 = arith.constant 5.000000e-01 : f32
    %115 = vector.broadcast %cst_94 : f32 to vector<8x128xf32>
    %116 = arith.mulf %115, %114 : vector<8x128xf32>
    %117 = math.tanh %116 : vector<8x128xf32>
    %cst_95 = arith.constant 5.000000e-01 : f32
    %118 = vector.broadcast %cst_95 : f32 to vector<8x128xf32>
    %119 = arith.mulf %118, %117 : vector<8x128xf32>
    %cst_96 = arith.constant 5.000000e-01 : f32
    %120 = vector.broadcast %cst_96 : f32 to vector<8x128xf32>
    %121 = arith.addf %119, %120 : vector<8x128xf32>
    %122 = vector.extract_strided_slice %113 {offsets = [0, 128], sizes = [8, 128], strides = [1, 1]} : vector<8x512xf32> to vector<8x128xf32>
    %cst_97 = arith.constant 5.000000e-01 : f32
    %123 = vector.broadcast %cst_97 : f32 to vector<8x128xf32>
    %124 = arith.mulf %123, %122 : vector<8x128xf32>
    %125 = math.tanh %124 : vector<8x128xf32>
    %cst_98 = arith.constant 5.000000e-01 : f32
    %126 = vector.broadcast %cst_98 : f32 to vector<8x128xf32>
    %127 = arith.mulf %126, %125 : vector<8x128xf32>
    %cst_99 = arith.constant 5.000000e-01 : f32
    %128 = vector.broadcast %cst_99 : f32 to vector<8x128xf32>
    %129 = arith.addf %127, %128 : vector<8x128xf32>
    %130 = vector.extract_strided_slice %113 {offsets = [0, 256], sizes = [8, 128], strides = [1, 1]} : vector<8x512xf32> to vector<8x128xf32>
    %131 = math.tanh %130 : vector<8x128xf32>
    %132 = vector.extract_strided_slice %113 {offsets = [0, 384], sizes = [8, 128], strides = [1, 1]} : vector<8x512xf32> to vector<8x128xf32>
    %cst_100 = arith.constant 5.000000e-01 : f32
    %133 = vector.broadcast %cst_100 : f32 to vector<8x128xf32>
    %134 = arith.mulf %133, %132 : vector<8x128xf32>
    %135 = math.tanh %134 : vector<8x128xf32>
    %cst_101 = arith.constant 5.000000e-01 : f32
    %136 = vector.broadcast %cst_101 : f32 to vector<8x128xf32>
    %137 = arith.mulf %136, %135 : vector<8x128xf32>
    %cst_102 = arith.constant 5.000000e-01 : f32
    %138 = vector.broadcast %cst_102 : f32 to vector<8x128xf32>
    %139 = arith.addf %137, %138 : vector<8x128xf32>
    %140 = arith.mulf %129, %106 : vector<8x128xf32>
    %141 = arith.mulf %121, %131 : vector<8x128xf32>
    %142 = arith.addf %140, %141 : vector<8x128xf32>
    %143 = math.tanh %142 : vector<8x128xf32>
    %144 = arith.mulf %139, %143 : vector<8x128xf32>
    %c2_103 = arith.constant 2 : index
    %c0_104 = arith.constant 0 : index
    %c0_105 = arith.constant 0 : index
    %145 = vector.load %arg10[%c2_103, %c0_104, %c0_105] : memref<5x8x512xf32, #tpu.memory_space<vmem>>, vector<1x8x512xf32>
    %146 = vector.shape_cast %145 : vector<1x8x512xf32> to vector<8x512xf32>
    %c0_106 = arith.constant 0 : index
    %c0_107 = arith.constant 0 : index
    %147 = vector.load %arg6[%c0_106, %c0_107] : memref<128x512xf32, #tpu.memory_space<vmem>>, vector<128x512xf32>
    %cst_108 = arith.constant dense<0.000000e+00> : vector<8x512xf32>
    %148 = tpu.matmul %144, %147, %cst_108 {dimension_numbers = #tpu.dot_dimension_numbers<[1], [0], [0], [1], [0, 0, 1, 1], [], []>} : vector<8x128xf32>, vector<128x512xf32>, vector<8x512xf32> -> vector<8x512xf32>
    %149 = arith.addf %146, %148 : vector<8x512xf32>
    %150 = vector.extract_strided_slice %149 {offsets = [0, 0], sizes = [8, 128], strides = [1, 1]} : vector<8x512xf32> to vector<8x128xf32>
    %cst_109 = arith.constant 5.000000e-01 : f32
    %151 = vector.broadcast %cst_109 : f32 to vector<8x128xf32>
    %152 = arith.mulf %151, %150 : vector<8x128xf32>
    %153 = math.tanh %152 : vector<8x128xf32>
    %cst_110 = arith.constant 5.000000e-01 : f32
    %154 = vector.broadcast %cst_110 : f32 to vector<8x128xf32>
    %155 = arith.mulf %154, %153 : vector<8x128xf32>
    %cst_111 = arith.constant 5.000000e-01 : f32
    %156 = vector.broadcast %cst_111 : f32 to vector<8x128xf32>
    %157 = arith.addf %155, %156 : vector<8x128xf32>
    %158 = vector.extract_strided_slice %149 {offsets = [0, 128], sizes = [8, 128], strides = [1, 1]} : vector<8x512xf32> to vector<8x128xf32>
    %cst_112 = arith.constant 5.000000e-01 : f32
    %159 = vector.broadcast %cst_112 : f32 to vector<8x128xf32>
    %160 = arith.mulf %159, %158 : vector<8x128xf32>
    %161 = math.tanh %160 : vector<8x128xf32>
    %cst_113 = arith.constant 5.000000e-01 : f32
    %162 = vector.broadcast %cst_113 : f32 to vector<8x128xf32>
    %163 = arith.mulf %162, %161 : vector<8x128xf32>
    %cst_114 = arith.constant 5.000000e-01 : f32
    %164 = vector.broadcast %cst_114 : f32 to vector<8x128xf32>
    %165 = arith.addf %163, %164 : vector<8x128xf32>
    %166 = vector.extract_strided_slice %149 {offsets = [0, 256], sizes = [8, 128], strides = [1, 1]} : vector<8x512xf32> to vector<8x128xf32>
    %167 = math.tanh %166 : vector<8x128xf32>
    %168 = vector.extract_strided_slice %149 {offsets = [0, 384], sizes = [8, 128], strides = [1, 1]} : vector<8x512xf32> to vector<8x128xf32>
    %cst_115 = arith.constant 5.000000e-01 : f32
    %169 = vector.broadcast %cst_115 : f32 to vector<8x128xf32>
    %170 = arith.mulf %169, %168 : vector<8x128xf32>
    %171 = math.tanh %170 : vector<8x128xf32>
    %cst_116 = arith.constant 5.000000e-01 : f32
    %172 = vector.broadcast %cst_116 : f32 to vector<8x128xf32>
    %173 = arith.mulf %172, %171 : vector<8x128xf32>
    %cst_117 = arith.constant 5.000000e-01 : f32
    %174 = vector.broadcast %cst_117 : f32 to vector<8x128xf32>
    %175 = arith.addf %173, %174 : vector<8x128xf32>
    %176 = arith.mulf %165, %142 : vector<8x128xf32>
    %177 = arith.mulf %157, %167 : vector<8x128xf32>
    %178 = arith.addf %176, %177 : vector<8x128xf32>
    %179 = math.tanh %178 : vector<8x128xf32>
    %180 = arith.mulf %175, %179 : vector<8x128xf32>
    %c3_118 = arith.constant 3 : index
    %c0_119 = arith.constant 0 : index
    %c0_120 = arith.constant 0 : index
    %181 = vector.load %arg10[%c3_118, %c0_119, %c0_120] : memref<5x8x512xf32, #tpu.memory_space<vmem>>, vector<1x8x512xf32>
    %182 = vector.shape_cast %181 : vector<1x8x512xf32> to vector<8x512xf32>
    %c0_121 = arith.constant 0 : index
    %c0_122 = arith.constant 0 : index
    %183 = vector.load %arg6[%c0_121, %c0_122] : memref<128x512xf32, #tpu.memory_space<vmem>>, vector<128x512xf32>
    %cst_123 = arith.constant dense<0.000000e+00> : vector<8x512xf32>
    %184 = tpu.matmul %180, %183, %cst_123 {dimension_numbers = #tpu.dot_dimension_numbers<[1], [0], [0], [1], [0, 0, 1, 1], [], []>} : vector<8x128xf32>, vector<128x512xf32>, vector<8x512xf32> -> vector<8x512xf32>
    %185 = arith.addf %182, %184 : vector<8x512xf32>
    %186 = vector.extract_strided_slice %185 {offsets = [0, 0], sizes = [8, 128], strides = [1, 1]} : vector<8x512xf32> to vector<8x128xf32>
    %cst_124 = arith.constant 5.000000e-01 : f32
    %187 = vector.broadcast %cst_124 : f32 to vector<8x128xf32>
    %188 = arith.mulf %187, %186 : vector<8x128xf32>
    %189 = math.tanh %188 : vector<8x128xf32>
    %cst_125 = arith.constant 5.000000e-01 : f32
    %190 = vector.broadcast %cst_125 : f32 to vector<8x128xf32>
    %191 = arith.mulf %190, %189 : vector<8x128xf32>
    %cst_126 = arith.constant 5.000000e-01 : f32
    %192 = vector.broadcast %cst_126 : f32 to vector<8x128xf32>
    %193 = arith.addf %191, %192 : vector<8x128xf32>
    %194 = vector.extract_strided_slice %185 {offsets = [0, 128], sizes = [8, 128], strides = [1, 1]} : vector<8x512xf32> to vector<8x128xf32>
    %cst_127 = arith.constant 5.000000e-01 : f32
    %195 = vector.broadcast %cst_127 : f32 to vector<8x128xf32>
    %196 = arith.mulf %195, %194 : vector<8x128xf32>
    %197 = math.tanh %196 : vector<8x128xf32>
    %cst_128 = arith.constant 5.000000e-01 : f32
    %198 = vector.broadcast %cst_128 : f32 to vector<8x128xf32>
    %199 = arith.mulf %198, %197 : vector<8x128xf32>
    %cst_129 = arith.constant 5.000000e-01 : f32
    %200 = vector.broadcast %cst_129 : f32 to vector<8x128xf32>
    %201 = arith.addf %199, %200 : vector<8x128xf32>
    %202 = vector.extract_strided_slice %185 {offsets = [0, 256], sizes = [8, 128], strides = [1, 1]} : vector<8x512xf32> to vector<8x128xf32>
    %203 = math.tanh %202 : vector<8x128xf32>
    %204 = vector.extract_strided_slice %185 {offsets = [0, 384], sizes = [8, 128], strides = [1, 1]} : vector<8x512xf32> to vector<8x128xf32>
    %cst_130 = arith.constant 5.000000e-01 : f32
    %205 = vector.broadcast %cst_130 : f32 to vector<8x128xf32>
    %206 = arith.mulf %205, %204 : vector<8x128xf32>
    %207 = math.tanh %206 : vector<8x128xf32>
    %cst_131 = arith.constant 5.000000e-01 : f32
    %208 = vector.broadcast %cst_131 : f32 to vector<8x128xf32>
    %209 = arith.mulf %208, %207 : vector<8x128xf32>
    %cst_132 = arith.constant 5.000000e-01 : f32
    %210 = vector.broadcast %cst_132 : f32 to vector<8x128xf32>
    %211 = arith.addf %209, %210 : vector<8x128xf32>
    %212 = arith.mulf %201, %178 : vector<8x128xf32>
    %213 = arith.mulf %193, %203 : vector<8x128xf32>
    %214 = arith.addf %212, %213 : vector<8x128xf32>
    %215 = math.tanh %214 : vector<8x128xf32>
    %216 = arith.mulf %211, %215 : vector<8x128xf32>
    %c4_133 = arith.constant 4 : index
    %c0_134 = arith.constant 0 : index
    %c0_135 = arith.constant 0 : index
    %217 = vector.load %arg10[%c4_133, %c0_134, %c0_135] : memref<5x8x512xf32, #tpu.memory_space<vmem>>, vector<1x8x512xf32>
    %218 = vector.shape_cast %217 : vector<1x8x512xf32> to vector<8x512xf32>
    %c0_136 = arith.constant 0 : index
    %c0_137 = arith.constant 0 : index
    %219 = vector.load %arg6[%c0_136, %c0_137] : memref<128x512xf32, #tpu.memory_space<vmem>>, vector<128x512xf32>
    %cst_138 = arith.constant dense<0.000000e+00> : vector<8x512xf32>
    %220 = tpu.matmul %216, %219, %cst_138 {dimension_numbers = #tpu.dot_dimension_numbers<[1], [0], [0], [1], [0, 0, 1, 1], [], []>} : vector<8x128xf32>, vector<128x512xf32>, vector<8x512xf32> -> vector<8x512xf32>
    %221 = arith.addf %218, %220 : vector<8x512xf32>
    %222 = vector.extract_strided_slice %221 {offsets = [0, 0], sizes = [8, 128], strides = [1, 1]} : vector<8x512xf32> to vector<8x128xf32>
    %cst_139 = arith.constant 5.000000e-01 : f32
    %223 = vector.broadcast %cst_139 : f32 to vector<8x128xf32>
    %224 = arith.mulf %223, %222 : vector<8x128xf32>
    %225 = math.tanh %224 : vector<8x128xf32>
    %cst_140 = arith.constant 5.000000e-01 : f32
    %226 = vector.broadcast %cst_140 : f32 to vector<8x128xf32>
    %227 = arith.mulf %226, %225 : vector<8x128xf32>
    %cst_141 = arith.constant 5.000000e-01 : f32
    %228 = vector.broadcast %cst_141 : f32 to vector<8x128xf32>
    %229 = arith.addf %227, %228 : vector<8x128xf32>
    %230 = vector.extract_strided_slice %221 {offsets = [0, 128], sizes = [8, 128], strides = [1, 1]} : vector<8x512xf32> to vector<8x128xf32>
    %cst_142 = arith.constant 5.000000e-01 : f32
    %231 = vector.broadcast %cst_142 : f32 to vector<8x128xf32>
    %232 = arith.mulf %231, %230 : vector<8x128xf32>
    %233 = math.tanh %232 : vector<8x128xf32>
    %cst_143 = arith.constant 5.000000e-01 : f32
    %234 = vector.broadcast %cst_143 : f32 to vector<8x128xf32>
    %235 = arith.mulf %234, %233 : vector<8x128xf32>
    %cst_144 = arith.constant 5.000000e-01 : f32
    %236 = vector.broadcast %cst_144 : f32 to vector<8x128xf32>
    %237 = arith.addf %235, %236 : vector<8x128xf32>
    %238 = vector.extract_strided_slice %221 {offsets = [0, 256], sizes = [8, 128], strides = [1, 1]} : vector<8x512xf32> to vector<8x128xf32>
    %239 = math.tanh %238 : vector<8x128xf32>
    %240 = vector.extract_strided_slice %221 {offsets = [0, 384], sizes = [8, 128], strides = [1, 1]} : vector<8x512xf32> to vector<8x128xf32>
    %cst_145 = arith.constant 5.000000e-01 : f32
    %241 = vector.broadcast %cst_145 : f32 to vector<8x128xf32>
    %242 = arith.mulf %241, %240 : vector<8x128xf32>
    %243 = math.tanh %242 : vector<8x128xf32>
    %cst_146 = arith.constant 5.000000e-01 : f32
    %244 = vector.broadcast %cst_146 : f32 to vector<8x128xf32>
    %245 = arith.mulf %244, %243 : vector<8x128xf32>
    %cst_147 = arith.constant 5.000000e-01 : f32
    %246 = vector.broadcast %cst_147 : f32 to vector<8x128xf32>
    %247 = arith.addf %245, %246 : vector<8x128xf32>
    %248 = arith.mulf %237, %214 : vector<8x128xf32>
    %249 = arith.mulf %229, %239 : vector<8x128xf32>
    %250 = arith.addf %248, %249 : vector<8x128xf32>
    %251 = math.tanh %250 : vector<8x128xf32>
    %252 = arith.mulf %247, %251 : vector<8x128xf32>
    %c0_148 = arith.constant 0 : index
    %c0_149 = arith.constant 0 : index
    %253 = vector.load %arg7[%c0_148, %c0_149] : memref<128x128xf32, #tpu.memory_space<vmem>>, vector<128x128xf32>
    %cst_150 = arith.constant dense<0.000000e+00> : vector<8x128xf32>
    %254 = tpu.matmul %252, %253, %cst_150 {dimension_numbers = #tpu.dot_dimension_numbers<[1], [0], [0], [1], [0, 0, 1, 1], [], []>} : vector<8x128xf32>, vector<128x128xf32>, vector<8x128xf32> -> vector<8x128xf32>
    %c0_151 = arith.constant 0 : index
    %c0_152 = arith.constant 0 : index
    %255 = vector.load %arg8[%c0_151, %c0_152] : memref<1x128xf32, #tpu.memory_space<vmem>>, vector<1x128xf32>
    %256 = vector.broadcast %255 : vector<1x128xf32> to vector<8x128xf32>
    %257 = arith.addf %254, %256 : vector<8x128xf32>
    %c0_153 = arith.constant 0 : index
    %c0_154 = arith.constant 0 : index
    %258 = vector.load %arg9[%c0_153, %c0_154] : memref<8x128xf32, #tpu.memory_space<vmem>>, vector<8x128xf32>
    tpu.vector_store %arg9[%c0_153, %c0_154], %257 {strides = array<i32>} : memref<8x128xf32, #tpu.memory_space<vmem>>, vector<8x128xf32>,
    return
  }
  func.func @transform_0(%arg0: i32) -> (i32, i32, i32) {
    %c0_i32 = arith.constant 0 : i32
    %c0_i32_0 = arith.constant 0 : i32
    %c0_i32_1 = arith.constant 0 : i32
    return %c0_i32, %arg0, %c0_i32_0 : i32, i32, i32
  }
  func.func @transform_1(%arg0: i32) -> (i32, i32, i32) {
    %c0_i32 = arith.constant 0 : i32
    %c0_i32_0 = arith.constant 0 : i32
    %c0_i32_1 = arith.constant 0 : i32
    return %c0_i32, %arg0, %c0_i32_0 : i32, i32, i32
  }
  func.func @transform_2(%arg0: i32) -> (i32, i32) {
    %c0_i32 = arith.constant 0 : i32
    %c0_i32_0 = arith.constant 0 : i32
    %c0_i32_1 = arith.constant 0 : i32
    return %c0_i32, %c0_i32_0 : i32, i32
  }
  func.func @transform_3(%arg0: i32) -> (i32, i32) {
    %c0_i32 = arith.constant 0 : i32
    %c0_i32_0 = arith.constant 0 : i32
    %c0_i32_1 = arith.constant 0 : i32
    return %c0_i32, %c0_i32_0 : i32, i32
  }
  func.func @transform_4(%arg0: i32) -> (i32, i32) {
    %c0_i32 = arith.constant 0 : i32
    %c0_i32_0 = arith.constant 0 : i32
    %c0_i32_1 = arith.constant 0 : i32
    return %c0_i32, %c0_i32_0 : i32, i32
  }
  func.func @transform_5(%arg0: i32) -> (i32, i32) {
    %c0_i32 = arith.constant 0 : i32
    %c0_i32_0 = arith.constant 0 : i32
    %c0_i32_1 = arith.constant 0 : i32
    return %c0_i32, %c0_i32_0 : i32, i32
  }
  func.func @transform_6(%arg0: i32) -> (i32, i32) {
    %c0_i32 = arith.constant 0 : i32
    %c0_i32_0 = arith.constant 0 : i32
    %c0_i32_1 = arith.constant 0 : i32
    return %c0_i32, %c0_i32_0 : i32, i32
  }
  func.func @transform_7(%arg0: i32) -> (i32, i32) {
    %c0_i32 = arith.constant 0 : i32
    %c0_i32_0 = arith.constant 0 : i32
    %c0_i32_1 = arith.constant 0 : i32
    return %c0_i32, %c0_i32_0 : i32, i32
  }
  func.func @transform_8(%arg0: i32) -> (i32, i32) {
    %c0_i32 = arith.constant 0 : i32
    %c0_i32_0 = arith.constant 0 : i32
    return %arg0, %c0_i32 : i32, i32
  }
}

</mosaic_0001>

<bundles_post_ra>
// kernel: multi_task_lstm_env_model.1
= control target key start
LH: loop header
LB: loop body
LE: loop exit
PB: predicated region body
PF: predicated region fallthrough
CT: control target
= control target key end

     0   :  { %vm84_vm0 = vcmask 1044480   ;;  %v4736_v3 = vmov 0.0   ;;  %vm80_vm1 = vcmask 367616   ;;  %vm3128_vm2 = vmmov 0   ;;  %s4727_s3 = inlined_call_operand.vmem [shape: f32[45,512], index: 3, kind: input, shape index: {}]   ;;  %s4728_s2 = inlined_call_operand.vmem [shape: f32[45,512], index: 2, kind: input, shape index: {}]   ;;  %s4729_s1 = inlined_call_operand.vmem [shape: f32[5,8,45], index: 1, kind: input, shape index: {}]   ;;  %s4730_s0 = inlined_call_operand.vmem [shape: f32[5,8,45], index: 0, kind: input, shape index: {}]   ;;  %s4731_s5 = inlined_call_operand.vmem [shape: f32[128,512], index: 5, kind: input, shape index: {}]   ;;  %s4732_s4 = inlined_call_operand.vmem [shape: f32[1,512], index: 4, kind: input, shape index: {}]   ;;  %s4733_s6 = inlined_call_operand.vmem [shape: f32[128,128], index: 6, kind: input, shape index: {}]   ;;  %s4734_s7 = inlined_call_operand.vmem [shape: f32[1,128], index: 7, kind: input, shape index: {}]   ;;  %s4735_s8 = inlined_call_operand.vmem [shape: f32[8,128], index: 8, kind: output, shape index: {}]  }
   0x1   :  { %v77_v0 = vld [vmem:[%s4727_s3 + $0xa8] sm:$0x1f]  ;;  %v76_v2 = vld [vmem:[%s4727_s3 + $0xa0] sm:$0x1f]  ;;  %161 = vmatprep.mubr.f32.mxu1 %v4736_v3  ;;  %318 = vmatprep.mubr.f32.mxu0 %v4736_v3  ;;  %v79_v26 = vld [vmem:[%s4727_s3 + $0xb8] sm:$0x1f] }
   0x2   :  { %v52_v1 = vld [vmem:[%s4728_s2 + $0xa8] sm:$0x1f]  ;;  %2927 = vmatprep.subr.msk.mxu1 %vm84_vm0, %v77_v0  ;;  %v51_v4 = vld [vmem:[%s4728_s2 + $0xa0] sm:$0x1f]  ;;  %v78_v29 = vld [vmem:[%s4727_s3 + $0xb0] sm:$0x1f] }
   0x3   :  { %2933 = vmatprep.subr.msk.mxu0 %vm84_vm0, %v52_v1  ;;  %v3193_v5 = vld [vmem:[%s4727_s3 + $0x88] sm:$0xff]  ;;  %2928 = vmatpush1.msk.msra.mxu1 %vm84_vm0, %v76_v2  ;;  %v3205_v7 = vld [vmem:[%s4727_s3 + $0x80] sm:$0xff]  ;;  %v3337_v31 = vld [vmem:[%s4727_s3 + $0x98] sm:$0xff] }
   0x4   :  { %v3198_v6 = vld [vmem:[%s4728_s2 + $0x88] sm:$0xff]  ;;  %2934 = vmatpush1.msk.msra.mxu0 %vm84_vm0, %v51_v4  ;;  %v3210_v8 = vld [vmem:[%s4728_s2 + $0x80] sm:$0xff]  ;;  %119 = vmatprep.subr.mxu1 %v3193_v5  ;;  %v3345_v32 = vld [vmem:[%s4727_s3 + $0x90] sm:$0xff] }
   0x5   :  { %v3215_v9 = vld [vmem:[%s4727_s3 + $0x68] sm:$0xff]  ;;  %276 = vmatprep.subr.mxu0 %v3198_v6  ;;  %v3227_v11 = vld [vmem:[%s4727_s3 + $0x60] sm:$0xff]  ;;  %120 = vmatpush1.msra.mxu1 %v3205_v7  ;;  %v3352_v33 = vld [vmem:[%s4727_s3 + $0x78] sm:$0xff] }
   0x6   :  { %v3222_v10 = vld [vmem:[%s4728_s2 + $0x68] sm:$0xff]  ;;  %v3232_v12 = vld [vmem:[%s4728_s2 + $0x60] sm:$0xff]  ;;  %277 = vmatpush1.msra.mxu0 %v3210_v8  ;;  %121 = vmatprep.subr.mxu1 %v3215_v9  ;;  %v3359_v34 = vld [vmem:[%s4727_s3 + $0x70] sm:$0xff] }
   0x7   :  { %v3239_v13 = vld [vmem:[%s4727_s3 + $0x48] sm:$0xff]  ;;  %278 = vmatprep.subr.mxu0 %v3222_v10  ;;  %v3251_v15 = vld [vmem:[%s4727_s3 + $0x40] sm:$0xff]  ;;  %122 = vmatpush1.msra.mxu1 %v3227_v11  ;;  %v3366_v35 = vld [vmem:[%s4727_s3 + $0x58] sm:$0xff] }
   0x8   :  { %v3244_v14 = vld [vmem:[%s4728_s2 + $0x48] sm:$0xff]  ;;  %v3256_v16 = vld [vmem:[%s4728_s2 + $0x40] sm:$0xff]  ;;  %279 = vmatpush1.msra.mxu0 %v3232_v12  ;;  %123 = vmatprep.subr.mxu1 %v3239_v13  ;;  %v3373_v36 = vld [vmem:[%s4727_s3 + $0x50] sm:$0xff] }
   0x9   :  { %v3263_v17 = vld [vmem:[%s4727_s3 + $0x28] sm:$0xff]  ;;  %280 = vmatprep.subr.mxu0 %v3244_v14  ;;  %v3275_v19 = vld [vmem:[%s4727_s3 + $0x20] sm:$0xff]  ;;  %124 = vmatpush1.msra.mxu1 %v3251_v15  ;;  %v3380_v37 = vld [vmem:[%s4727_s3 + $0x38] sm:$0xff] }
   0xa   :  { %v3268_v18 = vld [vmem:[%s4728_s2 + $0x28] sm:$0xff]  ;;  %v3280_v20 = vld [vmem:[%s4728_s2 + $0x20] sm:$0xff]  ;;  %281 = vmatpush1.msra.mxu0 %v3256_v16  ;;  %125 = vmatprep.subr.mxu1 %v3263_v17  ;;  %v3387_v38 = vld [vmem:[%s4727_s3 + $0x30] sm:$0xff] }
   0xb   :  { %v3287_v21 = vld [vmem:[%s4727_s3 + $0x8] sm:$0xff]  ;;  %282 = vmatprep.subr.mxu0 %v3268_v18  ;;  %v3299_v23 = vld [vmem:[%s4727_s3] sm:$0xff]  ;;  %126 = vmatpush1.msra.mxu1 %v3275_v19  ;;  %v3394_v39 = vld [vmem:[%s4727_s3 + $0x18] sm:$0xff] }
   0xc   :  { %v3292_v22 = vld [vmem:[%s4728_s2 + $0x8] sm:$0xff]  ;;  %v3304_v24 = vld [vmem:[%s4728_s2] sm:$0xff]  ;;  %283 = vmatpush1.msra.mxu0 %v3280_v20  ;;  %127 = vmatprep.subr.mxu1 %v3287_v21  ;;  %v3401_v40 = vld [vmem:[%s4727_s3 + $0x10] sm:$0xff] }
   0xd   :  { %v55_v25 = vld [vmem:[%s4729_s1] sm:$0xff]  ;;  %284 = vmatprep.subr.mxu0 %v3292_v22  ;;  %v474_v28 = vld [vmem:[%s4727_s3 + $0xa8] sm:$0x1f]  ;;  %128 = vmatpush1.msra.mxu1 %v3299_v23  ;;  %v54_v41 = vld [vmem:[%s4728_s2 + $0xb8] sm:$0x1f] }
   0xe   :  { %v3319_v27 = vld [vmem:[%s4730_s0] sm:$0xff]  ;;  %285 = vmatpush1.msra.mxu0 %v3304_v24  ;;  %2929 = vmatmul.mubr.msk.f32.vlgmr.msra.gmra.mxu1 %vm80_vm1, %v55_v25  ;;  %v448_v42 = vld [vmem:[%s4728_s2 + $0xa8] sm:$0x1f]  ;;  %v53_v43 = vld [vmem:[%s4728_s2 + $0xb0] sm:$0x1f] }
   0xf   :  { %v473_v30 = vld [vmem:[%s4727_s3 + $0xa0] sm:$0x1f]  ;;  %2930 = vmatprep.subr.msk.mxu1 %vm84_vm0, %v79_v26  ;;  %2935 = vmatmul.mubr.msk.f32.vlgmr.msra.gmra.mxu0 %vm80_vm1, %v3319_v27  ;;  %v3423_v44 = vld [vmem:[%s4729_s1 + $0x8] sm:$0xff]  ;;  %v3428_v45 = vld [vmem:[%s4728_s2 + $0x98] sm:$0xff] }
  0x10   :  { %2941 = vmatprep.subr.msk.mxu0 %vm84_vm0, %v474_v28  ;;  %2931 = vmatpush1.msk.msra.mxu1 %vm84_vm0, %v78_v29  ;;  %v447_v46 = vld [vmem:[%s4728_s2 + $0xa0] sm:$0x1f]  ;;  %v3438_v47 = vld [vmem:[%s4728_s2 + $0x90] sm:$0xff]  ;;  %v3445_v48 = vld [vmem:[%s4728_s2 + $0x78] sm:$0xff] }
  0x11   :  { %2942 = vmatpush1.msk.msra.mxu0 %vm84_vm0, %v473_v30  ;;  %190 = vmatprep.subr.mxu1 %v3337_v31  ;;  %v3453_v49 = vld [vmem:[%s4728_s2 + $0x70] sm:$0xff]  ;;  %v3460_v50 = vld [vmem:[%s4728_s2 + $0x58] sm:$0xff]  ;;  %v849_v57 = vld [vmem:[%s4727_s3 + $0xa8] sm:$0x1f] }
  0x12   :  { %514 = vmatprep.subr.mxu0 %v3193_v5  ;;  %191 = vmatpush1.msra.mxu1 %v3345_v32  ;;  %v3467_v51 = vld [vmem:[%s4728_s2 + $0x50] sm:$0xff]  ;;  %v3474_v52 = vld [vmem:[%s4728_s2 + $0x38] sm:$0xff]  ;;  %v3520_v59 = vld [vmem:[%s4730_s0 + $0x8] sm:$0xff] }
  0x13   :  { %515 = vmatpush1.msra.mxu0 %v3205_v7  ;;  %192 = vmatprep.subr.mxu1 %v3352_v33  ;;  %v3481_v53 = vld [vmem:[%s4728_s2 + $0x30] sm:$0xff]  ;;  %v3488_v54 = vld [vmem:[%s4728_s2 + $0x18] sm:$0xff]  ;;  %v848_v60 = vld [vmem:[%s4727_s3 + $0xa0] sm:$0x1f] }
  0x14   :  { %516 = vmatprep.subr.mxu0 %v3215_v9  ;;  %193 = vmatpush1.msra.mxu1 %v3359_v34  ;;  %v3495_v55 = vld [vmem:[%s4728_s2 + $0x10] sm:$0xff]  ;;  %v476_v56 = vld [vmem:[%s4727_s3 + $0xb8] sm:$0x1f]  ;;  %v823_v62 = vld [vmem:[%s4728_s2 + $0xa8] sm:$0x1f] }
  0x15   :  { %517 = vmatpush1.msra.mxu0 %v3227_v11  ;;  %194 = vmatprep.subr.mxu1 %v3366_v35  ;;  %v475_v58 = vld [vmem:[%s4727_s3 + $0xb0] sm:$0x1f]  ;;  %v450_v61 = vld [vmem:[%s4728_s2 + $0xb8] sm:$0x1f]  ;;  %v822_v1 = vld [vmem:[%s4728_s2 + $0xa0] sm:$0x1f] }
  0x16   :  { %518 = vmatprep.subr.mxu0 %v3239_v13  ;;  %195 = vmatpush1.msra.mxu1 %v3373_v36  ;;  %v449_v63 = vld [vmem:[%s4728_s2 + $0xb0] sm:$0x1f]  ;;  %v851_v2 = vld [vmem:[%s4727_s3 + $0xb8] sm:$0x1f]  ;;  %v1224_v4 = vld [vmem:[%s4727_s3 + $0xa8] sm:$0x1f] }
  0x17   :  { %519 = vmatpush1.msra.mxu0 %v3251_v15  ;;  %196 = vmatprep.subr.mxu1 %v3380_v37  ;;  %v3567_v0 = vld [vmem:[%s4729_s1 + $0x10] sm:$0xff]  ;;  %v825_v28 = vld [vmem:[%s4728_s2 + $0xb8] sm:$0x1f]  ;;  %v1198_v29 = vld [vmem:[%s4728_s2 + $0xa8] sm:$0x1f] }
  0x18   :  { %520 = vmatprep.subr.mxu0 %v3263_v17  ;;  %197 = vmatpush1.msra.mxu1 %v3387_v38  ;;  %v3614_v26 = vld [vmem:[%s4730_s0 + $0x10] sm:$0xff] }
  0x19   :  { %521 = vmatpush1.msra.mxu0 %v3275_v19  ;;  %198 = vmatprep.subr.mxu1 %v3394_v39  ;;  %v824_v30 = vld [vmem:[%s4728_s2 + $0xb0] sm:$0x1f] }
  0x1a   :  { %522 = vmatprep.subr.mxu0 %v3287_v21  ;;  %199 = vmatpush1.msra.mxu1 %v3401_v40 }
  0x1b   :  { %232 = vmatprep.mubr.f32.mxu1 %v4736_v3  ;;  %523 = vmatpush1.msra.mxu0 %v3299_v23 }
  0x1c   :  { %2932 = vmatmul.mubr.msk.f32.vlgmr.msra.gmra.mxu1 %vm80_vm1, %v55_v25  ;;  %2936 = vmatprep.subr.msk.mxu1 %vm84_vm0, %v54_v41  ;;  %v850_v25 = vld [vmem:[%s4727_s3 + $0xb0] sm:$0x1f]  ;;  %v3661_v41 = vld [vmem:[%s4729_s1 + $0x18] sm:$0xff] }
  0x1d   :  { %556 = vmatprep.mubr.f32.mxu0 %v4736_v3  ;;  %2947 = vmatprep.subr.msk.mxu0 %vm84_vm0, %v448_v42  ;;  %v1197_v42 = vld [vmem:[%s4728_s2 + $0xa0] sm:$0x1f] }
  0x1e   :  { %2937 = vmatpush1.msk.msra.mxu1 %vm84_vm0, %v53_v43  ;;  %2943 = vmatmul.mubr.msk.f32.vlgmr.msra.gmra.mxu0 %vm80_vm1, %v3423_v44  ;;  %v1226_v43 = vld [vmem:[%s4727_s3 + $0xb8] sm:$0x1f] }
  0x1f   :  { %347 = vmatprep.subr.mxu1 %v3428_v45  ;;  %2948 = vmatpush1.msk.msra.mxu0 %vm84_vm0, %v447_v46  ;;  %v1225_v46 = vld [vmem:[%s4727_s3 + $0xb0] sm:$0x1f] }
  0x20   :  { %348 = vmatpush1.msra.mxu1 %v3438_v47  ;;  %671 = vmatprep.subr.mxu0 %v3198_v6 }
  0x21   :  { %349 = vmatprep.subr.mxu1 %v3445_v48  ;;  %672 = vmatpush1.msra.mxu0 %v3210_v8 }
  0x22   :  { %350 = vmatpush1.msra.mxu1 %v3453_v49  ;;  %673 = vmatprep.subr.mxu0 %v3222_v10 }
  0x23   :  { %351 = vmatprep.subr.mxu1 %v3460_v50  ;;  %674 = vmatpush1.msra.mxu0 %v3232_v12 }
  0x24   :  { %352 = vmatpush1.msra.mxu1 %v3467_v51  ;;  %675 = vmatprep.subr.mxu0 %v3244_v14 }
  0x25   :  { %353 = vmatprep.subr.mxu1 %v3474_v52  ;;  %676 = vmatpush1.msra.mxu0 %v3256_v16 }
  0x26   :  { %354 = vmatpush1.msra.mxu1 %v3481_v53  ;;  %677 = vmatprep.subr.mxu0 %v3268_v18 }
  0x27   :  { %355 = vmatprep.subr.mxu1 %v3488_v54  ;;  %678 = vmatpush1.msra.mxu0 %v3280_v20 }
  0x28   :  { %356 = vmatpush1.msra.mxu1 %v3495_v55  ;;  %679 = vmatprep.subr.mxu0 %v3292_v22 }
  0x29   :  { %389 = vmatprep.mubr.f32.mxu1 %v4736_v3  ;;  %680 = vmatpush1.msra.mxu0 %v3304_v24 }
  0x2a   :  { %2938 = vmatmul.mubr.msk.f32.vlgmr.msra.gmra.mxu1 %vm80_vm1, %v3319_v27  ;;  %2944 = vmatprep.subr.msk.mxu1 %vm84_vm0, %v476_v56  ;;  %v1223_v27 = vld [vmem:[%s4727_s3 + $0xa0] sm:$0x1f]  ;;  %v3708_v56 = vld [vmem:[%s4730_s0 + $0x18] sm:$0xff] }
  0x2b   :  { %713 = vmatprep.mubr.f32.mxu0 %v4736_v3  ;;  %2955 = vmatprep.subr.msk.mxu0 %vm84_vm0, %v849_v57  ;;  %v1598_v57 = vld [vmem:[%s4727_s3 + $0xa0] sm:$0x1f] }
  0x2c   :  { %2945 = vmatpush1.msk.msra.mxu1 %vm84_vm0, %v475_v58  ;;  %2949 = vmatmul.mubr.msk.f32.vlgmr.msra.gmra.mxu0 %vm80_vm1, %v3520_v59  ;;  %v4019_v58 = vld [vmem:[%s4731_s5 + $0x40] sm:$0xff] }
  0x2d   :  { %585 = vmatprep.subr.mxu1 %v3337_v31  ;;  %2956 = vmatpush1.msk.msra.mxu0 %vm84_vm0, %v848_v60  ;;  %4809 = vst [vmem:[#allocation13_spill] sm:$0xff] %v4019_v58  ;;  %v4031_v60 = vld [vmem:[%s4731_s5 + $0x28] sm:$0xff] }
  0x2e   :  { %586 = vmatpush1.msra.mxu1 %v3345_v32  ;;  %889 = vmatprep.subr.mxu0 %v3193_v5  ;;  %4810 = vst [vmem:[#allocation14_spill] sm:$0xff] %v4031_v60 }
  0x2f   :  { %587 = vmatprep.subr.mxu1 %v3352_v33  ;;  %890 = vmatpush1.msra.mxu0 %v3205_v7 }
  0x30   :  { %588 = vmatpush1.msra.mxu1 %v3359_v34  ;;  %891 = vmatprep.subr.mxu0 %v3215_v9 }
  0x31   :  { %589 = vmatprep.subr.mxu1 %v3366_v35  ;;  %892 = vmatpush1.msra.mxu0 %v3227_v11 }
  0x32   :  { %590 = vmatpush1.msra.mxu1 %v3373_v36  ;;  %893 = vmatprep.subr.mxu0 %v3239_v13 }
  0x33   :  { %591 = vmatprep.subr.mxu1 %v3380_v37  ;;  %894 = vmatpush1.msra.mxu0 %v3251_v15 }
  0x34   :  { %592 = vmatpush1.msra.mxu1 %v3387_v38  ;;  %895 = vmatprep.subr.mxu0 %v3263_v17 }
  0x35   :  { %593 = vmatprep.subr.mxu1 %v3394_v39  ;;  %896 = vmatpush1.msra.mxu0 %v3275_v19 }
  0x36   :  { %594 = vmatpush1.msra.mxu1 %v3401_v40  ;;  %897 = vmatprep.subr.mxu0 %v3287_v21 }
  0x37   :  { %627 = vmatprep.mubr.f32.mxu1 %v4736_v3  ;;  %898 = vmatpush1.msra.mxu0 %v3299_v23 }
  0x38   :  { %2946 = vmatmul.mubr.msk.f32.vlgmr.msra.gmra.mxu1 %vm80_vm1, %v3423_v44  ;;  %2950 = vmatprep.subr.msk.mxu1 %vm84_vm0, %v450_v61  ;;  %v1599_v44 = vld [vmem:[%s4727_s3 + $0xa8] sm:$0x1f]  ;;  %v4036_v61 = vld [vmem:[%s4731_s5 + $0x1b8] sm:$0xff] }
  0x39   :  { %931 = vmatprep.mubr.f32.mxu0 %v4736_v3  ;;  %2961 = vmatprep.subr.msk.mxu0 %vm84_vm0, %v823_v62  ;;  %v4043_v62 = vld [vmem:[%s4731_s5 + $0x20] sm:$0xff] }
  0x3a   :  { %2951 = vmatpush1.msk.msra.mxu1 %vm84_vm0, %v449_v63  ;;  %2957 = vmatmul.mubr.msk.f32.vlgmr.msra.gmra.mxu0 %vm80_vm1, %v3567_v0  ;;  %4811 = vst [vmem:[#allocation15_spill] sm:$0xff] %v4043_v62  ;;  %v4048_v63 = vld [vmem:[%s4731_s5 + $0x1b0] sm:$0xff] }
  0x3b   :  { %742 = vmatprep.subr.mxu1 %v3428_v45  ;;  %2962 = vmatpush1.msk.msra.mxu0 %vm84_vm0, %v822_v1  ;;  %v4060_v1 = vld [vmem:[%s4731_s5 + $0x198] sm:$0xff] }
  0x3c   :  { %743 = vmatpush1.msra.mxu1 %v3438_v47  ;;  %1046 = vmatprep.subr.mxu0 %v3198_v6 }
  0x3d   :  { %744 = vmatprep.subr.mxu1 %v3445_v48  ;;  %1047 = vmatpush1.msra.mxu0 %v3210_v8 }
  0x3e   :  { %745 = vmatpush1.msra.mxu1 %v3453_v49  ;;  %1048 = vmatprep.subr.mxu0 %v3222_v10 }
  0x3f   :  { %746 = vmatprep.subr.mxu1 %v3460_v50  ;;  %1049 = vmatpush1.msra.mxu0 %v3232_v12 }
  0x40   :  { %747 = vmatpush1.msra.mxu1 %v3467_v51  ;;  %1050 = vmatprep.subr.mxu0 %v3244_v14 }
  0x41   :  { %748 = vmatprep.subr.mxu1 %v3474_v52  ;;  %1051 = vmatpush1.msra.mxu0 %v3256_v16 }
  0x42   :  { %749 = vmatpush1.msra.mxu1 %v3481_v53  ;;  %1052 = vmatprep.subr.mxu0 %v3268_v18 }
  0x43   :  { %750 = vmatprep.subr.mxu1 %v3488_v54  ;;  %1053 = vmatpush1.msra.mxu0 %v3280_v20 }
  0x44   :  { %751 = vmatpush1.msra.mxu1 %v3495_v55  ;;  %1054 = vmatprep.subr.mxu0 %v3292_v22 }
  0x45   :  { %784 = vmatprep.mubr.f32.mxu1 %v4736_v3  ;;  %1055 = vmatpush1.msra.mxu0 %v3304_v24 }
  0x46   :  { %2952 = vmatmul.mubr.msk.f32.vlgmr.msra.gmra.mxu1 %vm80_vm1, %v3520_v59  ;;  %2958 = vmatprep.subr.msk.mxu1 %vm84_vm0, %v851_v2  ;;  %v4024_v59 = vld [vmem:[%s4731_s5 + $0x1d0] sm:$0xff]  ;;  %v4067_v2 = vld [vmem:[%s4731_s5] sm:$0xff] }
  0x47   :  { %1088 = vmatprep.mubr.f32.mxu0 %v4736_v3  ;;  %2969 = vmatprep.subr.msk.mxu0 %vm84_vm0, %v1224_v4  ;;  %4813 = vst [vmem:[#allocation17_spill] sm:$0xff] %v4067_v2  ;;  %v4074_v4 = vld [vmem:[%s4731_s5 + $0x190] sm:$0xff] }
  0x48   :  { %2959 = vmatpush1.msk.msra.mxu1 %vm84_vm0, %v850_v25  ;;  %2963 = vmatmul.mubr.msk.f32.vlgmr.msra.gmra.mxu0 %vm80_vm1, %v3614_v26  ;;  %v4081_v25 = vld [vmem:[%s4731_s5 + $0x178] sm:$0xff] }
  0x49   :  { %960 = vmatprep.subr.mxu1 %v3337_v31  ;;  %2970 = vmatpush1.msk.msra.mxu0 %vm84_vm0, %v1223_v27  ;;  %v4095_v27 = vld [vmem:[%s4731_s5 + $0x158] sm:$0xff] }
  0x4a   :  { %961 = vmatpush1.msra.mxu1 %v3345_v32  ;;  %1264 = vmatprep.subr.mxu0 %v3193_v5 }
  0x4b   :  { %962 = vmatprep.subr.mxu1 %v3352_v33  ;;  %1265 = vmatpush1.msra.mxu0 %v3205_v7 }
  0x4c   :  { %963 = vmatpush1.msra.mxu1 %v3359_v34  ;;  %1266 = vmatprep.subr.mxu0 %v3215_v9 }
  0x4d   :  { %964 = vmatprep.subr.mxu1 %v3366_v35  ;;  %1267 = vmatpush1.msra.mxu0 %v3227_v11 }
  0x4e   :  { %965 = vmatpush1.msra.mxu1 %v3373_v36  ;;  %1268 = vmatprep.subr.mxu0 %v3239_v13 }
  0x4f   :  { %966 = vmatprep.subr.mxu1 %v3380_v37  ;;  %1269 = vmatpush1.msra.mxu0 %v3251_v15 }
  0x50   :  { %967 = vmatpush1.msra.mxu1 %v3387_v38  ;;  %1270 = vmatprep.subr.mxu0 %v3263_v17 }
  0x51   :  { %968 = vmatprep.subr.mxu1 %v3394_v39  ;;  %1271 = vmatpush1.msra.mxu0 %v3275_v19 }
  0x52   :  { %969 = vmatpush1.msra.mxu1 %v3401_v40  ;;  %1272 = vmatprep.subr.mxu0 %v3287_v21 }
  0x53   :  { %1002 = vmatprep.mubr.f32.mxu1 %v4736_v3  ;;  %1273 = vmatpush1.msra.mxu0 %v3299_v23 }
  0x54   :  { %2960 = vmatmul.mubr.msk.f32.vlgmr.msra.gmra.mxu1 %vm80_vm1, %v3567_v0  ;;  %2964 = vmatprep.subr.msk.mxu1 %vm84_vm0, %v825_v28  ;;  %v4055_v0 = vld [vmem:[%s4731_s5 + $0x8] sm:$0xff]  ;;  %v4101_v28 = vld [vmem:[%s4731_s5 + $0x150] sm:$0xff] }
  0x55   :  { %1306 = vmatprep.mubr.f32.mxu0 %v4736_v3  ;;  %2975 = vmatprep.subr.msk.mxu0 %vm84_vm0, %v1198_v29  ;;  %4812 = vst [vmem:[#allocation16_spill] sm:$0xff] %v4055_v0  ;;  %v4108_v29 = vld [vmem:[%s4731_s5 + $0x138] sm:$0xff] }
  0x56   :  { %2965 = vmatpush1.msk.msra.mxu1 %vm84_vm0, %v824_v30  ;;  %2971 = vmatmul.mubr.msk.f32.vlgmr.msra.gmra.mxu0 %vm80_vm1, %v3661_v41  ;;  %v4115_v30 = vld [vmem:[%s4731_s5 + $0x130] sm:$0xff] }
  0x57   :  { %1117 = vmatprep.subr.mxu1 %v3428_v45  ;;  %2976 = vmatpush1.msk.msra.mxu0 %vm84_vm0, %v1197_v42  ;;  %v4129_v42 = vld [vmem:[%s4731_s5 + $0x110] sm:$0xff] }
  0x58   :  { %1118 = vmatpush1.msra.mxu1 %v3438_v47  ;;  %1421 = vmatprep.subr.mxu0 %v3198_v6 }
  0x59   :  { %1119 = vmatprep.subr.mxu1 %v3445_v48  ;;  %1422 = vmatpush1.msra.mxu0 %v3210_v8 }
  0x5a   :  { %1120 = vmatpush1.msra.mxu1 %v3453_v49  ;;  %1423 = vmatprep.subr.mxu0 %v3222_v10 }
  0x5b   :  { %1121 = vmatprep.subr.mxu1 %v3460_v50  ;;  %1424 = vmatpush1.msra.mxu0 %v3232_v12 }
  0x5c   :  { %1122 = vmatpush1.msra.mxu1 %v3467_v51  ;;  %1425 = vmatprep.subr.mxu0 %v3244_v14 }
  0x5d   :  { %1123 = vmatprep.subr.mxu1 %v3474_v52  ;;  %1426 = vmatpush1.msra.mxu0 %v3256_v16 }
  0x5e   :  { %1124 = vmatpush1.msra.mxu1 %v3481_v53  ;;  %1427 = vmatprep.subr.mxu0 %v3268_v18 }
  0x5f   :  { %1125 = vmatprep.subr.mxu1 %v3488_v54  ;;  %1428 = vmatpush1.msra.mxu0 %v3280_v20 }
  0x60   :  { %1126 = vmatpush1.msra.mxu1 %v3495_v55  ;;  %1429 = vmatprep.subr.mxu0 %v3292_v22 }
  0x61   :  { %1159 = vmatprep.mubr.f32.mxu1 %v4736_v3  ;;  %1430 = vmatpush1.msra.mxu0 %v3304_v24 }
  0x62   :  { %2966 = vmatmul.mubr.msk.f32.vlgmr.msra.gmra.mxu1 %vm80_vm1, %v3614_v26  ;;  %2972 = vmatprep.subr.msk.mxu1 %vm84_vm0, %v1226_v43  ;;  %v4088_v26 = vld [vmem:[%s4731_s5 + $0x170] sm:$0xff]  ;;  %v4136_v43 = vld [vmem:[%s4731_s5 + $0xf8] sm:$0xff] }
  0x63   :  { %1463 = vmatprep.mubr.f32.mxu0 %v4736_v3  ;;  %2983 = vmatprep.subr.msk.mxu0 %vm84_vm0, %v1599_v44  ;;  %v4143_v44 = vld [vmem:[%s4731_s5 + $0xf0] sm:$0xff] }
  0x64   :  { %2973 = vmatpush1.msk.msra.mxu1 %vm84_vm0, %v1225_v46  ;;  %2977 = vmatmul.mubr.msk.f32.vlgmr.msra.gmra.mxu0 %vm80_vm1, %v3708_v56  ;;  %v4150_v46 = vld [vmem:[%s4731_s5 + $0xd8] sm:$0xff] }
  0x65   :  { %1335 = vmatprep.subr.mxu1 %v3337_v31  ;;  %2984 = vmatpush1.msk.msra.mxu0 %vm84_vm0, %v1598_v57  ;;  %v4164_v57 = vld [vmem:[%s4731_s5 + $0xb8] sm:$0xff] }
  0x66   :  { %1336 = vmatpush1.msra.mxu1 %v3345_v32  ;;  %1639 = vmatprep.subr.mxu0 %v3193_v5  ;;  %v1200_v5 = vld [vmem:[%s4728_s2 + $0xb8] sm:$0x1f]  ;;  %4815 = vst [vmem:[#allocation19_spill] sm:$0xff] %v4164_v57 }
  0x67   :  { %1337 = vmatprep.subr.mxu1 %v3352_v33  ;;  %1640 = vmatpush1.msra.mxu0 %v3205_v7  ;;  %v1573_v7 = vld [vmem:[%s4728_s2 + $0xa8] sm:$0x1f] }
  0x68   :  { %1338 = vmatpush1.msra.mxu1 %v3359_v34  ;;  %1641 = vmatprep.subr.mxu0 %v3215_v9  ;;  %v1199_v9 = vld [vmem:[%s4728_s2 + $0xb0] sm:$0x1f] }
  0x69   :  { %1339 = vmatprep.subr.mxu1 %v3366_v35  ;;  %1642 = vmatpush1.msra.mxu0 %v3227_v11  ;;  %v3755_v11 = vld [vmem:[%s4729_s1 + $0x20] sm:$0xff] }
  0x6a   :  { %1340 = vmatpush1.msra.mxu1 %v3373_v36  ;;  %1643 = vmatprep.subr.mxu0 %v3239_v13  ;;  %v1572_v13 = vld [vmem:[%s4728_s2 + $0xa0] sm:$0x1f] }
  0x6b   :  { %1341 = vmatprep.subr.mxu1 %v3380_v37  ;;  %1644 = vmatpush1.msra.mxu0 %v3251_v15  ;;  %v3818_v15 = vld [vmem:[%s4731_s5 + $0x1c8] sm:$0xff] }
  0x6c   :  { %1342 = vmatpush1.msra.mxu1 %v3387_v38  ;;  %1645 = vmatprep.subr.mxu0 %v3263_v17  ;;  %v3833_v17 = vld [vmem:[%s4731_s5 + $0x1a8] sm:$0xff] }
  0x6d   :  { %1343 = vmatprep.subr.mxu1 %v3394_v39  ;;  %1646 = vmatpush1.msra.mxu0 %v3275_v19  ;;  %v3847_v19 = vld [vmem:[%s4731_s5 + $0x188] sm:$0xff] }
  0x6e   :  { %1344 = vmatpush1.msra.mxu1 %v3401_v40  ;;  %1647 = vmatprep.subr.mxu0 %v3287_v21  ;;  %v3861_v21 = vld [vmem:[%s4731_s5 + $0x168] sm:$0xff] }
  0x6f   :  { %1377 = vmatprep.mubr.f32.mxu1 %v4736_v3  ;;  %1648 = vmatpush1.msra.mxu0 %v3299_v23  ;;  %v3875_v23 = vld [vmem:[%s4731_s5 + $0x148] sm:$0xff] }
  0x70   :  { %2974 = vmatmul.mubr.msk.f32.vlgmr.msra.gmra.mxu1 %vm80_vm1, %v3661_v41  ;;  %2978 = vmatprep.subr.msk.mxu1 %vm84_vm0, %v1200_v5  ;;  %v4122_v41 = vld [vmem:[%s4731_s5 + $0x118] sm:$0xff]  ;;  %v4171_v5 = vld [vmem:[%s4731_s5 + $0xb0] sm:$0xff] }
  0x71   :  { %1681 = vmatprep.mubr.f32.mxu0 %v4736_v3  ;;  %2989 = vmatprep.subr.msk.mxu0 %vm84_vm0, %v1573_v7  ;;  %4816 = vst [vmem:[#allocation20_spill] sm:$0xff] %v4171_v5  ;;  %v4178_v7 = vld [vmem:[%s4731_s5 + $0x98] sm:$0xff] }
  0x72   :  { %2979 = vmatpush1.msk.msra.mxu1 %vm84_vm0, %v1199_v9  ;;  %2985 = vmatmul.mubr.msk.f32.vlgmr.msra.gmra.mxu0 %vm80_vm1, %v3755_v11  ;;  %4817 = vst [vmem:[#allocation21_spill] sm:$0xff] %v4178_v7  ;;  %v4185_v9 = vld [vmem:[%s4731_s5 + $0x90] sm:$0xff] }
  0x73   :  { %1492 = vmatprep.subr.mxu1 %v3428_v45  ;;  %2990 = vmatpush1.msk.msra.mxu0 %vm84_vm0, %v1572_v13  ;;  %4818 = vst [vmem:[#allocation22_spill] sm:$0xff] %v4185_v9  ;;  %v4199_v13 = vld [vmem:[%s4731_s5 + $0x70] sm:$0xff] }
  0x74   :  { %1493 = vmatpush1.msra.mxu1 %v3438_v47  ;;  %1796 = vmatprep.subr.mxu0 %v3198_v6  ;;  %v1601_v6 = vld [vmem:[%s4727_s3 + $0xb8] sm:$0x1f]  ;;  %4820 = vst [vmem:[#allocation24_spill] sm:$0xff] %v4199_v13 }
  0x75   :  { %1494 = vmatprep.subr.mxu1 %v3445_v48  ;;  %1797 = vmatpush1.msra.mxu0 %v3210_v8  ;;  %v3793_v8 = vld [vmem:[%s4731_s5 + $0x1e8] sm:$0xff] }
  0x76   :  { %1495 = vmatpush1.msra.mxu1 %v3453_v49  ;;  %1798 = vmatprep.subr.mxu0 %v3222_v10  ;;  %4799 = vst [vmem:[#allocation3_spill] sm:$0xff] %v3793_v8  ;;  %v1600_v10 = vld [vmem:[%s4727_s3 + $0xb0] sm:$0x1f] }
  0x77   :  { %1496 = vmatprep.subr.mxu1 %v3460_v50  ;;  %1799 = vmatpush1.msra.mxu0 %v3232_v12  ;;  %v3804_v12 = vld [vmem:[%s4730_s0 + $0x20] sm:$0xff] }
  0x78   :  { %1497 = vmatpush1.msra.mxu1 %v3467_v51  ;;  %1800 = vmatprep.subr.mxu0 %v3244_v14  ;;  %v3811_v14 = vld [vmem:[%s4731_s5 + $0x1e0] sm:$0xff] }
  0x79   :  { %1498 = vmatprep.subr.mxu1 %v3474_v52  ;;  %1801 = vmatpush1.msra.mxu0 %v3256_v16  ;;  %v3826_v16 = vld [vmem:[%s4731_s5 + $0x1c0] sm:$0xff] }
  0x7a   :  { %1499 = vmatpush1.msra.mxu1 %v3481_v53  ;;  %1802 = vmatprep.subr.mxu0 %v3268_v18  ;;  %v3840_v18 = vld [vmem:[%s4731_s5 + $0x1a0] sm:$0xff] }
  0x7b   :  { %1500 = vmatprep.subr.mxu1 %v3488_v54  ;;  %1803 = vmatpush1.msra.mxu0 %v3280_v20  ;;  %v3854_v20 = vld [vmem:[%s4731_s5 + $0x180] sm:$0xff] }
  0x7c   :  { %1501 = vmatpush1.msra.mxu1 %v3495_v55  ;;  %1804 = vmatprep.subr.mxu0 %v3292_v22  ;;  %v3868_v22 = vld [vmem:[%s4731_s5 + $0x160] sm:$0xff] }
  0x7d   :  { %1534 = vmatprep.mubr.f32.mxu1 %v4736_v3  ;;  %1805 = vmatpush1.msra.mxu0 %v3304_v24  ;;  %v3882_v24 = vld [vmem:[%s4731_s5 + $0x140] sm:$0xff] }
  0x7e   :  { %2980 = vmatmul.mubr.msk.f32.vlgmr.msra.gmra.mxu1 %vm80_vm1, %v3708_v56  ;;  %2986 = vmatprep.subr.msk.mxu1 %vm84_vm0, %v1601_v6  ;;  %v4157_v56 = vld [vmem:[%s4731_s5 + $0xd0] sm:$0xff]  ;;  %v4206_v6 = vld [vmem:[%s4731_s5 + $0x58] sm:$0xff] }
  0x7f   :  { %1838 = vmatprep.mubr.f32.mxu0 %v4736_v3  ;;  %1993 = vmatprep.subr.mxu0 %v3793_v8  ;;  %4814 = vst [vmem:[#allocation18_spill] sm:$0xff] %v4157_v56  ;;  %4821 = vst [vmem:[#allocation25_spill] sm:$0xff] %v4206_v6 }
  0x80   :  { %2987 = vmatpush1.msk.msra.mxu1 %vm84_vm0, %v1600_v10  ;;  %2991 = vmatmul.mubr.msk.f32.vlgmr.msra.gmra.mxu0 %vm80_vm1, %v3804_v12  ;;  %v4213_v10 = vld [vmem:[%s4731_s5 + $0x50] sm:$0xff] }
  0x81   :  { %1710 = vmatprep.subr.mxu1 %v3337_v31  ;;  %1994 = vmatpush1.msra.mxu0 %v3811_v14  ;;  %v1575_v31 = vld [vmem:[%s4728_s2 + $0xb8] sm:$0x1f]  ;;  %4822 = vst [vmem:[#allocation26_spill] sm:$0xff] %v4213_v10 }
  0x82   :  { %1711 = vmatpush1.msra.mxu1 %v3345_v32  ;;  %1995 = vmatprep.subr.mxu0 %v3818_v15  ;;  %v3892_v32 = vld [vmem:[%s4731_s5 + $0x128] sm:$0xff] }
  0x83   :  { %1712 = vmatprep.subr.mxu1 %v3352_v33  ;;  %1996 = vmatpush1.msra.mxu0 %v3826_v16  ;;  %v1574_v33 = vld [vmem:[%s4728_s2 + $0xb0] sm:$0x1f] }
  0x84   :  { %1713 = vmatpush1.msra.mxu1 %v3359_v34  ;;  %1997 = vmatprep.subr.mxu0 %v3833_v17  ;;  %v3902_v34 = vld [vmem:[%s4731_s5 + $0x120] sm:$0xff] }
  0x85   :  { %1714 = vmatprep.subr.mxu1 %v3366_v35  ;;  %1998 = vmatpush1.msra.mxu0 %v3840_v18  ;;  %v3910_v35 = vld [vmem:[%s4731_s5 + $0x108] sm:$0xff] }
  0x86   :  { %1715 = vmatpush1.msra.mxu1 %v3373_v36  ;;  %1999 = vmatprep.subr.mxu0 %v3847_v19  ;;  %v3917_v36 = vld [vmem:[%s4731_s5 + $0x100] sm:$0xff] }
  0x87   :  { %1716 = vmatprep.subr.mxu1 %v3380_v37  ;;  %2000 = vmatpush1.msra.mxu0 %v3854_v20  ;;  %v3924_v37 = vld [vmem:[%s4731_s5 + $0xe8] sm:$0xff] }
  0x88   :  { %1717 = vmatpush1.msra.mxu1 %v3387_v38  ;;  %2001 = vmatprep.subr.mxu0 %v3861_v21  ;;  %v3931_v38 = vld [vmem:[%s4731_s5 + $0xe0] sm:$0xff] }
  0x89   :  { %1718 = vmatprep.subr.mxu1 %v3394_v39  ;;  %2002 = vmatpush1.msra.mxu0 %v3868_v22  ;;  %v3938_v39 = vld [vmem:[%s4731_s5 + $0xc8] sm:$0xff] }
  0x8a   :  { %1719 = vmatpush1.msra.mxu1 %v3401_v40  ;;  %2003 = vmatprep.subr.mxu0 %v3875_v23  ;;  %4800 = vst [vmem:[#allocation4_spill] sm:$0xff] %v3938_v39  ;;  %v3945_v40 = vld [vmem:[%s4731_s5 + $0xc0] sm:$0xff] }
  0x8b   :  { %1752 = vmatprep.mubr.f32.mxu1 %v4736_v3  ;;  %2004 = vmatpush1.msra.mxu0 %v3882_v24 }
  0x8c   :  { %2988 = vmatmul.mubr.msk.f32.vlgmr.msra.gmra.mxu1 %vm80_vm1, %v3755_v11  ;;  %2992 = vmatprep.subr.msk.mxu1 %vm84_vm0, %v1575_v31  ;;  %v4192_v11 = vld [vmem:[%s4731_s5 + $0x78] sm:$0xff]  ;;  %v4227_v31 = vld [vmem:[%s4731_s5 + $0x30] sm:$0xff] }
  0x8d   :  { %2005 = vmatprep.subr.mxu0 %v3892_v32  ;;  %2993 = vmatpush1.msk.msra.mxu1 %vm84_vm0, %v1574_v33  ;;  %4819 = vst [vmem:[#allocation23_spill] sm:$0xff] %v4192_v11  ;;  %4824 = vst [vmem:[#allocation28_spill] sm:$0xff] %v4227_v31  ;;  %v4234_v33 = vld [vmem:[%s4731_s5 + $0x18] sm:$0xff] }
  0x8e   :  { %2006 = vmatpush1.msra.mxu0 %v3902_v34  ;;  %1867 = vmatprep.subr.mxu1 %v3428_v45  ;;  %v3952_v45 = vld [vmem:[%s4731_s5 + $0xa8] sm:$0xff]  ;;  %4825 = vst [vmem:[#allocation29_spill] sm:$0xff] %v4234_v33 }
  0x8f   :  { %2007 = vmatprep.subr.mxu0 %v3910_v35  ;;  %1868 = vmatpush1.msra.mxu1 %v3438_v47  ;;  %4801 = vst [vmem:[#allocation5_spill] sm:$0xff] %v3952_v45  ;;  %v3959_v47 = vld [vmem:[%s4731_s5 + $0xa0] sm:$0xff] }
  0x90   :  { %2008 = vmatpush1.msra.mxu0 %v3917_v36  ;;  %1869 = vmatprep.subr.mxu1 %v3445_v48  ;;  %4802 = vst [vmem:[#allocation6_spill] sm:$0xff] %v3959_v47  ;;  %v3966_v48 = vld [vmem:[%s4731_s5 + $0x88] sm:$0xff] }
  0x91   :  { %2009 = vmatprep.subr.mxu0 %v3924_v37  ;;  %1870 = vmatpush1.msra.mxu1 %v3453_v49  ;;  %4803 = vst [vmem:[#allocation7_spill] sm:$0xff] %v3966_v48  ;;  %v3975_v49 = vld [vmem:[%s4731_s5 + $0x80] sm:$0xff] }
  0x92   :  { %2010 = vmatpush1.msra.mxu0 %v3931_v38  ;;  %1871 = vmatprep.subr.mxu1 %v3460_v50  ;;  %4804 = vst [vmem:[#allocation8_spill] sm:$0xff] %v3975_v49  ;;  %v3982_v50 = vld [vmem:[%s4731_s5 + $0x68] sm:$0xff] }
  0x93   :  { %2011 = vmatprep.subr.mxu0 %v3938_v39  ;;  %1872 = vmatpush1.msra.mxu1 %v3467_v51  ;;  %4805 = vst [vmem:[#allocation9_spill] sm:$0xff] %v3982_v50  ;;  %v3987_v51 = vld [vmem:[%s4731_s5 + $0x1f8] sm:$0xff] }
  0x94   :  { %2012 = vmatpush1.msra.mxu0 %v3945_v40  ;;  %1873 = vmatprep.subr.mxu1 %v3474_v52  ;;  %4806 = vst [vmem:[#allocation10_spill] sm:$0xff] %v3987_v51  ;;  %v3994_v52 = vld [vmem:[%s4731_s5 + $0x60] sm:$0xff] }
  0x95   :  { %2013 = vmatprep.subr.mxu0 %v3952_v45  ;;  %1874 = vmatpush1.msra.mxu1 %v3481_v53  ;;  %4807 = vst [vmem:[#allocation11_spill] sm:$0xff] %v3994_v52  ;;  %v3999_v53 = vld [vmem:[%s4731_s5 + $0x1f0] sm:$0xff] }
  0x96   :  { %2014 = vmatpush1.msra.mxu0 %v3959_v47  ;;  %1875 = vmatprep.subr.mxu1 %v3488_v54  ;;  %v4007_v54 = vld [vmem:[%s4731_s5 + $0x48] sm:$0xff] }
  0x97   :  { %2015 = vmatprep.subr.mxu0 %v3966_v48  ;;  %1876 = vmatpush1.msra.mxu1 %v3495_v55  ;;  %4808 = vst [vmem:[#allocation12_spill] sm:$0xff] %v4007_v54  ;;  %v4012_v55 = vld [vmem:[%s4731_s5 + $0x1d8] sm:$0xff] }
  0x98   :  { %1909 = vmatprep.mubr.f32.mxu1 %v4736_v3  ;;  %2016 = vmatpush1.msra.mxu0 %v3975_v49 }
  0x99   :  { %2994 = vmatmul.mubr.msk.f32.vlgmr.msra.gmra.mxu1 %vm80_vm1, %v3804_v12  ;;  %2017 = vmatprep.subr.mxu0 %v3982_v50  ;;  %v4220_v12 = vld [vmem:[%s4731_s5 + $0x38] sm:$0xff] }
  0x9a   :  { %2064 = vmatprep.subr.mxu1 %v3987_v51  ;;  %2018 = vmatpush1.msra.mxu0 %v3994_v52  ;;  %4823 = vst [vmem:[#allocation27_spill] sm:$0xff] %v4220_v12 }
  0x9b   :  { %2065 = vmatpush1.msra.mxu1 %v3999_v53  ;;  %2019 = vmatprep.subr.mxu0 %v4007_v54 }
  0x9c   :  { %2066 = vmatprep.subr.mxu1 %v4012_v55  ;;  %2020 = vmatpush1.msra.mxu0 %v4019_v58 }
  0x9d   :  { %2067 = vmatpush1.msra.mxu1 %v4024_v59  ;;  %2021 = vmatprep.subr.mxu0 %v4031_v60 }
  0x9e   :  { %2068 = vmatprep.subr.mxu1 %v4036_v61  ;;  %2022 = vmatpush1.msra.mxu0 %v4043_v62 }
  0x9f   :  { %2069 = vmatpush1.msra.mxu1 %v4048_v63  ;;  %2023 = vmatprep.subr.mxu0 %v4055_v0 }
  0xa0   :  { %2070 = vmatprep.subr.mxu1 %v4060_v1  ;;  %2024 = vmatpush1.msra.mxu0 %v4067_v2 }
  0xa1   :  { %2057 = vmatprep.mubr.f32.mxu0 %v4736_v3  ;;  %2071 = vmatpush1.msra.mxu1 %v4074_v4 }
  0xa2   :  { %2058 = vmatmul.mubr.f32.vlgmr.msra.gmra.mxu0 %v4736_v3  ;;  %2072 = vmatprep.subr.mxu1 %v4081_v25 }
  0xa3   :  { %2128 = vmatprep.mubr.f32.mxu1 %v4736_v3  ;;  %2073 = vmatpush1.msra.mxu1 %v4088_v26  ;;  %v4241_v3 = vld [vmem:[%s4731_s5 + $0x10] sm:$0xff] }
  0xa4   :  { %2161 = vmatprep.subr.mxu0 %v3793_v8  ;;  %2074 = vmatprep.subr.mxu1 %v4095_v27  ;;  %4826 = vst [vmem:[#allocation30_spill] sm:$0xff] %v4241_v3 }
  0xa5   :  { %2162 = vmatpush1.msra.mxu0 %v3811_v14  ;;  %2075 = vmatpush1.msra.mxu1 %v4101_v28 }
  0xa6   :  { %2163 = vmatprep.subr.mxu0 %v3818_v15  ;;  %2076 = vmatprep.subr.mxu1 %v4108_v29 }
  0xa7   :  { %2164 = vmatpush1.msra.mxu0 %v3826_v16  ;;  %2077 = vmatpush1.msra.mxu1 %v4115_v30 }
  0xa8   :  { %2165 = vmatprep.subr.mxu0 %v3833_v17  ;;  %2078 = vmatprep.subr.mxu1 %v4122_v41 }
  0xa9   :  { %2166 = vmatpush1.msra.mxu0 %v3840_v18  ;;  %2079 = vmatpush1.msra.mxu1 %v4129_v42 }
  0xaa   :  { %2167 = vmatprep.subr.mxu0 %v3847_v19  ;;  %2080 = vmatprep.subr.mxu1 %v4136_v43 }
  0xab   :  { %2168 = vmatpush1.msra.mxu0 %v3854_v20  ;;  %2081 = vmatpush1.msra.mxu1 %v4143_v44 }
  0xac   :  { %2169 = vmatprep.subr.mxu0 %v3861_v21  ;;  %2082 = vmatprep.subr.mxu1 %v4150_v46 }
  0xad   :  { %2170 = vmatpush1.msra.mxu0 %v3868_v22  ;;  %2083 = vmatpush1.msra.mxu1 %v4157_v56 }
  0xae   :  { %2171 = vmatprep.subr.mxu0 %v3875_v23  ;;  %2084 = vmatprep.subr.mxu1 %v4164_v57 }
  0xaf   :  { %2172 = vmatpush1.msra.mxu0 %v3882_v24  ;;  %2085 = vmatpush1.msra.mxu1 %v4171_v5 }
  0xb0   :  { %2173 = vmatprep.subr.mxu0 %v3892_v32  ;;  %2086 = vmatprep.subr.mxu1 %v4178_v7 }
  0xb1   :  { %2174 = vmatpush1.msra.mxu0 %v3902_v34  ;;  %2087 = vmatpush1.msra.mxu1 %v4185_v9 }
  0xb2   :  { %2175 = vmatprep.subr.mxu0 %v3910_v35  ;;  %2088 = vmatprep.subr.mxu1 %v4192_v11 }
  0xb3   :  { %2176 = vmatpush1.msra.mxu0 %v3917_v36  ;;  %2089 = vmatpush1.msra.mxu1 %v4199_v13 }
  0xb4   :  { %2177 = vmatprep.subr.mxu0 %v3924_v37  ;;  %2090 = vmatprep.subr.mxu1 %v4206_v6 }
  0xb5   :  { %2178 = vmatpush1.msra.mxu0 %v3931_v38  ;;  %2091 = vmatpush1.msra.mxu1 %v4213_v10 }
  0xb6   :  { %2179 = vmatprep.subr.mxu0 %v3938_v39  ;;  %2092 = vmatprep.subr.mxu1 %v4220_v12  ;;  %v4827_v39 = vmov 0.0  }
  0xb7   :  { %2180 = vmatpush1.msra.mxu0 %v3945_v40  ;;  %2093 = vmatpush1.msra.mxu1 %v4227_v31 }
  0xb8   :  { %2181 = vmatprep.subr.mxu0 %v3952_v45  ;;  %2094 = vmatprep.subr.mxu1 %v4234_v33 }
  0xb9   :  { %2182 = vmatpush1.msra.mxu0 %v3959_v47  ;;  %2095 = vmatpush1.msra.mxu1 %v4241_v3 }
  0xba   :  { %2183 = vmatprep.subr.mxu0 %v3966_v48  ;;  %2129 = vmatmul.mubr.f32.vlgmr.msra.gmra.mxu1 %v4827_v39 }
  0xbb   :  { %2232 = vmatprep.subr.mxu1 %v3987_v51  ;;  %2184 = vmatpush1.msra.mxu0 %v3975_v49 }
  0xbc   :  { %2233 = vmatpush1.msra.mxu1 %v3999_v53  ;;  %2185 = vmatprep.subr.mxu0 %v3982_v50 }
  0xbd   :  { %2234 = vmatprep.subr.mxu1 %v4012_v55  ;;  %2186 = vmatpush1.msra.mxu0 %v3994_v52 }
  0xbe   :  { %2235 = vmatpush1.msra.mxu1 %v4024_v59  ;;  %2187 = vmatprep.subr.mxu0 %v4007_v54 }
  0xbf   :  { %2236 = vmatprep.subr.mxu1 %v4036_v61  ;;  %2188 = vmatpush1.msra.mxu0 %v4019_v58 }
  0xc0   :  { %2237 = vmatpush1.msra.mxu1 %v4048_v63  ;;  %2189 = vmatprep.subr.mxu0 %v4031_v60 }
  0xc1   :  { %2238 = vmatprep.subr.mxu1 %v4060_v1  ;;  %2190 = vmatpush1.msra.mxu0 %v4043_v62 }
  0xc2   :  { %2239 = vmatpush1.msra.mxu1 %v4074_v4  ;;  %2191 = vmatprep.subr.mxu0 %v4055_v0 }
  0xc3   :  { %2240 = vmatprep.subr.mxu1 %v4081_v25  ;;  %2192 = vmatpush1.msra.mxu0 %v4067_v2 }
  0xc4   :  { %2241 = vmatpush1.msra.mxu1 %v4088_v26  ;;  %2225 = vmatprep.mubr.f32.mxu0 %v4827_v39 }
  0xc5   :  { %2242 = vmatprep.subr.mxu1 %v4095_v27  ;;  %2296 = vmatprep.mubr.f32.mxu1 %v4827_v39 }
  0xc6   :  { %2243 = vmatpush1.msra.mxu1 %v4101_v28  ;;  %2329 = vmatprep.subr.mxu0 %v3793_v8 }
  0xc7   :  { %2244 = vmatprep.subr.mxu1 %v4108_v29 }
  0xc8   :  { %2245 = vmatpush1.msra.mxu1 %v4115_v30 }
  0xc9   :  { %2246 = vmatprep.subr.mxu1 %v4122_v41 }
  0xca   :  { %2247 = vmatpush1.msra.mxu1 %v4129_v42 }
  0xcb   :  { %2248 = vmatprep.subr.mxu1 %v4136_v43 }
  0xcc   :  { %2249 = vmatpush1.msra.mxu1 %v4143_v44 }
  0xcd   :  { %2250 = vmatprep.subr.mxu1 %v4150_v46 }
  0xce   :  { %2251 = vmatpush1.msra.mxu1 %v4157_v56  ;;  %v163_v60 = vpop.f32.mrf.mxu1 }
  0xcf   :  { %2252 = vmatprep.subr.mxu1 %v4164_v57  ;;  %v4296_v8 = vpop.f32.mrf.mxu0 }
  0xd0   :  { %2253 = vmatpush1.msra.mxu1 %v4171_v5 }
  0xd1   :  { %2254 = vmatprep.subr.mxu1 %v4178_v7  ;;  %v322_v39 = vpop.f32.mrf.mxu0 }
  0xd2   :  { %2255 = vmatpush1.msra.mxu1 %v4185_v9 }
  0xd3   :  { %2256 = vmatprep.subr.mxu1 %v4192_v11 }
  0xd4   :  { %2257 = vmatpush1.msra.mxu1 %v4199_v13 }
  0xd5   :  { %2258 = vmatprep.subr.mxu1 %v4206_v6 }
  0xd6   :  { %2259 = vmatpush1.msra.mxu1 %v4213_v10 }
  0xd7   :  { %2260 = vmatprep.subr.mxu1 %v4220_v12  ;;  %v165_v12 = vpop.f32.mrf.mxu1 }
  0xd8   :  { %2261 = vmatpush1.msra.mxu1 %v4227_v31 }
  0xd9   :  { %2262 = vmatprep.subr.mxu1 %v4234_v33 }
  0xda   :  { %2263 = vmatpush1.msra.mxu1 %v4241_v3 }
  0xdb   :  { %2400 = vmatprep.subr.mxu1 %v3987_v51 }
  0xdc   :  { %v4302_v31 = vpop.f32.mrf.mxu1 }
  0xde   :  { %v558_v2 = vpop.f32.mrf.mxu0  ;;  %v4304_v33 = vpop.f32.mrf.mxu1 }
  0xe0   :  { %v560_v0 = vpop.f32.mrf.mxu0 }
  0xea   :  { %v4306_v3 = vpop.f32.mrf.mxu1 }
  0xec   :  { %v715_v62 = vpop.f32.mrf.mxu0  ;;  %v4308_v51 = vpop.f32.mrf.mxu1 }
  0xed   :  { %v4298_v58 = vadd.f32 %v715_v62, %v558_v2 }
  0xee   :  { %v717_v10 = vpop.f32.mrf.mxu0 }
  0xef   :  { %4828 = vst [vmem:[#allocation31_spill] sm:$0xff] %v4298_v58  ;;  %v4300_v6 = vadd.f32 %v717_v10, %v560_v0 }
  0xf1   :  { %4829 = vst [vmem:[#allocation32_spill] sm:$0xff] %v4300_v6 }
  0xf8   :  { %v629_v54 = vpop.f32.mrf.mxu1 }
  0xfa   :  { %v933_v13 = vpop.f32.mrf.mxu0  ;;  %v631_v52 = vpop.f32.mrf.mxu1 }
  0xfc   :  { %v935_v11 = vpop.f32.mrf.mxu0 }
 0x106   :  { %v786_v50 = vpop.f32.mrf.mxu1 }
 0x107   :  { %v4310_v9 = vadd.f32 %v786_v50, %v629_v54 }
 0x108   :  { %v788_v62 = vpop.f32.mrf.mxu1  ;;  %v1090_v0 = vpop.f32.mrf.mxu0 }
 0x109   :  { %4830 = vst [vmem:[#allocation33_spill] sm:$0xff] %v4310_v9  ;;  %v4312_v2 = vadd.f32 %v788_v62, %v631_v52  ;;  %v4314_v10 = vadd.f32 %v1090_v0, %v933_v13 }
 0x10a   :  { %v1092_v6 = vpop.f32.mrf.mxu0 }
 0x10b   :  { %4831 = vst [vmem:[#allocation34_spill] sm:$0xff] %v4312_v2  ;;  %4832 = vst [vmem:[#allocation35_spill] sm:$0xff] %v4314_v10  ;;  %v4316_v58 = vadd.f32 %v1092_v6, %v935_v11 }
 0x10d   :  { %4833 = vst [vmem:[#allocation36_spill] sm:$0xff] %v4316_v58 }
 0x114   :  { %v1004_v49 = vpop.f32.mrf.mxu1 }
 0x116   :  { %v1308_v7 = vpop.f32.mrf.mxu0  ;;  %v1006_v48 = vpop.f32.mrf.mxu1 }
 0x118   :  { %v1310_v5 = vpop.f32.mrf.mxu0 }
 0x122   :  { %v1161_v47 = vpop.f32.mrf.mxu1 }
 0x123   :  { %v4318_v57 = vadd.f32 %v1161_v47, %v1004_v49 }
 0x124   :  { %v1163_v45 = vpop.f32.mrf.mxu1  ;;  %v1465_v50 = vpop.f32.mrf.mxu0 }
 0x125   :  { %4834 = vst [vmem:[#allocation37_spill] sm:$0xff] %v4318_v57  ;;  %v4320_v56 = vadd.f32 %v1163_v45, %v1006_v48  ;;  %v4322_v54 = vadd.f32 %v1465_v50, %v1308_v7  ;;  %v4868_v57 = vld [vmem:[#allocation16_spill] sm:$0xff] }
 0x126   :  { %v1467_v52 = vpop.f32.mrf.mxu0 }
 0x127   :  { %4835 = vst [vmem:[#allocation38_spill] sm:$0xff] %v4320_v56  ;;  %4836 = vst [vmem:[#allocation39_spill] sm:$0xff] %v4322_v54  ;;  %v4324_v62 = vadd.f32 %v1467_v52, %v1310_v5 }
 0x129   :  { %4837 = vst [vmem:[#allocation40_spill] sm:$0xff] %v4324_v62  ;;  %v397_v62 = vlaneseq }
 0x130   :  { %v1379_v13 = vpop.f32.mrf.mxu1 }
 0x132   :  { %v1683_v0 = vpop.f32.mrf.mxu0  ;;  %v1381_v11 = vpop.f32.mrf.mxu1 }
 0x134   :  { %v1685_v6 = vpop.f32.mrf.mxu0 }
 0x13e   :  { %v1536_v58 = vpop.f32.mrf.mxu1 }
 0x13f   :  { %v4326_v10 = vadd.f32 %v1536_v58, %v1379_v13  ;;  %v398_v58 = vshrl.u32 %v397_v62, 7 }
 0x140   :  { %v1538_v2 = vpop.f32.mrf.mxu1  ;;  %v1840_v47 = vpop.f32.mrf.mxu0 }
 0x141   :  { %4838 = vst [vmem:[#allocation41_spill] sm:$0xff] %v4326_v10  ;;  %v4328_v9 = vadd.f32 %v1538_v2, %v1381_v11  ;;  %v4330_v49 = vadd.f32 %v1840_v47, %v1683_v0  ;;  %v403_v13 = vsub.s32 1, %v398_v58  ;;  %v29_v2 = vld [vmem:[%s4732_s4] sm:$0xf]  ;;  %v399_v0 = vsub.s32 0, %v398_v58  ;;  %v4867_v10 = vld [vmem:[#allocation28_spill] sm:$0xff] }
 0x142   :  { %v1842_v45 = vpop.f32.mrf.mxu0  ;;  %v323_v47 = vadd.f32 %v322_v39, %v165_v12  ;;  %v392_v39 = vadd.f32 %v4306_v3, %v4302_v31 }
 0x143   :  { %4839 = vst [vmem:[#allocation42_spill] sm:$0xff] %v4328_v9  ;;  %4840 = vst [vmem:[#allocation43_spill] sm:$0xff] %v4330_v49  ;;  %v4332_v48 = vadd.f32 %v1842_v45, %v1685_v6  ;;  %v4341_v6 = vrot.slane %v29_v2, %v403_v13  ;;  %v321_v45 = vadd.f32 %v4296_v8, %v163_v60  ;;  %v407_v49 = vsub.s32 2, %v398_v58  ;;  %v4866_v9 = vld [vmem:[#allocation15_spill] sm:$0xff] }
 0x144   :  { %v411_v8 = vsub.s32 3, %v398_v58  ;;  %v394_v60 = vadd.f32 %v4308_v51, %v4304_v33 }
 0x145   :  { %4841 = vst [vmem:[#allocation44_spill] sm:$0xff] %v4332_v48  ;;  %4844 = vst [vmem:[#allocation47_spill] sm:$0xff] %v4341_v6  ;;  %v4344_v48 = vrot.slane %v29_v2, %v399_v0  ;;  %v4350_v12 = vrot.slane %v29_v2, %v407_v49 }
 0x146   :  { %v4355_v0 = vrot.slane %v29_v2, %v411_v8 }
 0x147   :  { %4845 = vst [vmem:[#allocation48_spill] sm:$0xff] %v4344_v48  ;;  %v419_v13 = vadd.f32 %v4350_v12, %v392_v39 }
 0x14c   :  { %v1754_v7 = vpop.f32.mrf.mxu1 }
 0x14e   :  { %v1756_v50 = vpop.f32.mrf.mxu1 }
 0x159   :  { %v1911_v5 = vpop.f32.mrf.mxu1 }
 0x15a   :  { %v4334_v52 = vadd.f32 %v1911_v5, %v1754_v7  ;;  %v418_v5 = vadd.f32 %v4341_v6, %v323_v47 }
 0x15b   :  { %v1913_v54 = vpop.f32.mrf.mxu1 }
 0x15c   :  { %4842 = vst [vmem:[#allocation45_spill] sm:$0xff] %v4334_v52  ;;  %v4336_v56 = vadd.f32 %v1913_v54, %v1756_v50  ;;  %v417_v54 = vadd.f32 %v4344_v48, %v321_v45 }
 0x15e   :  { %4843 = vst [vmem:[#allocation46_spill] sm:$0xff] %v4336_v56 }
 0x162   :  { %v2059_v11 = vpop.f32.mrf.mxu0 }
 0x163   :  { %v2135_v50 = vadd.f32 %v2059_v11, %v417_v54 }
 0x164   :  { %v2061_v7 = vpop.f32.mrf.mxu0 }
 0x165   :  { %v2136_v62 = vadd.f32 %v2061_v7, %v418_v5  ;;  %v2139_v52 = vmul.f32 0.5, %v2135_v50 }
 0x167   :  { %v2143_v56 = vmul.f32 0.5, %v2136_v62 }
 0x169   :  { %3050 = vtanh.f32 %v2143_v56  ;;  %v420_v56 = vadd.f32 %v4355_v0, %v394_v60 }
 0x16a   :  { %3052 = vtanh.f32 %v2139_v52 }
 0x176   :  { %v3051_v5 = vpop.eup %3050 }
 0x177   :  { %v3053_v3 = vpop.eup %3052  ;;  %v2145_v31 = vmul.f32 0.5, %v3051_v5  ;;  %v4851_v5 = vld [vmem:[#allocation20_spill] sm:$0xff] }
 0x178   :  { %v2141_v52 = vmul.f32 0.5, %v3053_v3  ;;  %v4852_v3 = vld [vmem:[#allocation7_spill] sm:$0xff] }
 0x179   :  { %v2146_v58 = vadd.f32 0.5, %v2145_v31  ;;  %v4853_v31 = vld [vmem:[#allocation21_spill] sm:$0xff] }
 0x17a   :  { %v2130_v47 = vpop.f32.mrf.mxu1  ;;  %v2142_v54 = vadd.f32 0.5, %v2141_v52  ;;  %v4855_v52 = vld [vmem:[#allocation22_spill] sm:$0xff] }
 0x17b   :  { %v2137_v11 = vadd.f32 %v2130_v47, %v419_v13  ;;  %v2152_v33 = vmul.f32 0.0, %v2146_v58  ;;  %v4846_v47 = vld [vmem:[#allocation4_spill] sm:$0xff]  ;;  %v4856_v58 = vld [vmem:[#allocation9_spill] sm:$0xff] }
 0x17c   :  { %v2132_v45 = vpop.f32.mrf.mxu1 }
 0x17d   :  { %3054 = vtanh.f32 %v2137_v11  ;;  %v2138_v7 = vadd.f32 %v2132_v45, %v420_v56  ;;  %v4847_v11 = vld [vmem:[#allocation18_spill] sm:$0xff]  ;;  %v4848_v45 = vld [vmem:[#allocation5_spill] sm:$0xff]  ;;  %v4849_v56 = vld [vmem:[#allocation19_spill] sm:$0xff] }
 0x17f   :  { %v2148_v49 = vmul.f32 0.5, %v2138_v7  ;;  %v4850_v7 = vld [vmem:[#allocation6_spill] sm:$0xff] }
 0x181   :  { %3056 = vtanh.f32 %v2148_v49  ;;  %v4854_v49 = vld [vmem:[#allocation8_spill] sm:$0xff] }
 0x18a   :  { %v3055_v51 = vpop.eup %3054 }
 0x18b   :  { %v2153_v62 = vmul.f32 %v3055_v51, %v2142_v54  ;;  %v4857_v54 = vld [vmem:[#allocation23_spill] sm:$0xff] }
 0x18c   :  { %v4858_v51 = vld [vmem:[#allocation11_spill] sm:$0xff] }
 0x18d   :  { %v4358_v2 = vadd.f32 %v2153_v62, %v2152_v33  ;;  %v4859_v33 = vld [vmem:[#allocation24_spill] sm:$0xff] }
 0x18e   :  { %v3057_v50 = vpop.eup %3056  ;;  %v4860_v62 = vld [vmem:[#allocation12_spill] sm:$0xff] }
 0x18f   :  { %3058 = vtanh.f32 %v4358_v2  ;;  %v2150_v39 = vmul.f32 0.5, %v3057_v50  ;;  %v4861_v50 = vld [vmem:[#allocation25_spill] sm:$0xff] }
 0x191   :  { %v2151_v8 = vadd.f32 0.5, %v2150_v39  ;;  %v4862_v39 = vld [vmem:[#allocation13_spill] sm:$0xff] }
 0x19c   :  { %v3059_v60 = vpop.eup %3058 }
 0x19d   :  { %v2156_v13 = vmul.f32 %v3059_v60, %v2151_v8  ;;  %v4863_v8 = vld [vmem:[#allocation26_spill] sm:$0xff] }
 0x19e   :  { %v4864_v60 = vld [vmem:[#allocation14_spill] sm:$0xff] }
 0x19f   :  { %2226 = vmatmul.mubr.f32.vlgmr.msra.gmra.mxu0 %v2156_v13  ;;  %2297 = vmatmul.mubr.f32.vlgmr.msra.gmra.mxu1 %v2156_v13  ;;  %v4865_v13 = vld [vmem:[#allocation27_spill] sm:$0xff] }
 0x1a0   :  { %2330 = vmatpush1.msra.mxu0 %v3811_v14  ;;  %2401 = vmatpush1.msra.mxu1 %v3999_v53 }
 0x1a1   :  { %2331 = vmatprep.subr.mxu0 %v3818_v15  ;;  %2402 = vmatprep.subr.mxu1 %v4012_v55 }
 0x1a2   :  { %2332 = vmatpush1.msra.mxu0 %v3826_v16  ;;  %2403 = vmatpush1.msra.mxu1 %v4024_v59 }
 0x1a3   :  { %2333 = vmatprep.subr.mxu0 %v3833_v17  ;;  %2404 = vmatprep.subr.mxu1 %v4036_v61 }
 0x1a4   :  { %2334 = vmatpush1.msra.mxu0 %v3840_v18  ;;  %2405 = vmatpush1.msra.mxu1 %v4048_v63 }
 0x1a5   :  { %2335 = vmatprep.subr.mxu0 %v3847_v19  ;;  %2406 = vmatprep.subr.mxu1 %v4060_v1 }
 0x1a6   :  { %2336 = vmatpush1.msra.mxu0 %v3854_v20  ;;  %2407 = vmatpush1.msra.mxu1 %v4074_v4 }
 0x1a7   :  { %2337 = vmatprep.subr.mxu0 %v3861_v21  ;;  %2408 = vmatprep.subr.mxu1 %v4081_v25 }
 0x1a8   :  { %2338 = vmatpush1.msra.mxu0 %v3868_v22  ;;  %2409 = vmatpush1.msra.mxu1 %v4088_v26 }
 0x1a9   :  { %2339 = vmatprep.subr.mxu0 %v3875_v23  ;;  %2410 = vmatprep.subr.mxu1 %v4095_v27 }
 0x1aa   :  { %2340 = vmatpush1.msra.mxu0 %v3882_v24  ;;  %2411 = vmatpush1.msra.mxu1 %v4101_v28 }
 0x1ab   :  { %2341 = vmatprep.subr.mxu0 %v3892_v32  ;;  %2412 = vmatprep.subr.mxu1 %v4108_v29 }
 0x1ac   :  { %2342 = vmatpush1.msra.mxu0 %v3902_v34  ;;  %2413 = vmatpush1.msra.mxu1 %v4115_v30 }
 0x1ad   :  { %2343 = vmatprep.subr.mxu0 %v3910_v35  ;;  %2414 = vmatprep.subr.mxu1 %v4122_v41 }
 0x1ae   :  { %2344 = vmatpush1.msra.mxu0 %v3917_v36  ;;  %2415 = vmatpush1.msra.mxu1 %v4129_v42 }
 0x1af   :  { %2345 = vmatprep.subr.mxu0 %v3924_v37  ;;  %2416 = vmatprep.subr.mxu1 %v4136_v43 }
 0x1b0   :  { %2346 = vmatpush1.msra.mxu0 %v3931_v38  ;;  %2417 = vmatpush1.msra.mxu1 %v4143_v44 }
 0x1b1   :  { %2347 = vmatprep.subr.mxu0 %v4846_v47  ;;  %2418 = vmatprep.subr.mxu1 %v4150_v46 }
 0x1b2   :  { %2348 = vmatpush1.msra.mxu0 %v3945_v40  ;;  %2419 = vmatpush1.msra.mxu1 %v4847_v11 }
 0x1b3   :  { %2349 = vmatprep.subr.mxu0 %v4848_v45  ;;  %2420 = vmatprep.subr.mxu1 %v4849_v56 }
 0x1b4   :  { %2350 = vmatpush1.msra.mxu0 %v4850_v7  ;;  %2421 = vmatpush1.msra.mxu1 %v4851_v5 }
 0x1b5   :  { %2351 = vmatprep.subr.mxu0 %v4852_v3  ;;  %2422 = vmatprep.subr.mxu1 %v4853_v31 }
 0x1b6   :  { %2352 = vmatpush1.msra.mxu0 %v4854_v49  ;;  %2423 = vmatpush1.msra.mxu1 %v4855_v52  ;;  %v4877_v52 = vld [vmem:[#allocation33_spill] sm:$0xff] }
 0x1b7   :  { %2353 = vmatprep.subr.mxu0 %v4856_v58  ;;  %2424 = vmatprep.subr.mxu1 %v4857_v54 }
 0x1b8   :  { %2354 = vmatpush1.msra.mxu0 %v4858_v51  ;;  %2425 = vmatpush1.msra.mxu1 %v4859_v33  ;;  %v4869_v51 = vld [vmem:[#allocation29_spill] sm:$0xff] }
 0x1b9   :  { %2355 = vmatprep.subr.mxu0 %v4860_v62  ;;  %2426 = vmatprep.subr.mxu1 %v4861_v50  ;;  %v4870_v33 = vld [vmem:[#allocation17_spill] sm:$0xff]  ;;  %v4871_v62 = vmov 0.0   ;;  %v4872_v50 = vld [vmem:[#allocation30_spill] sm:$0xff] }
 0x1ba   :  { %2356 = vmatpush1.msra.mxu0 %v4862_v39  ;;  %2427 = vmatpush1.msra.mxu1 %v4863_v8  ;;  %v4873_v8 = vld [vmem:[#allocation3_spill] sm:$0xff] }
 0x1bb   :  { %2357 = vmatprep.subr.mxu0 %v4864_v60  ;;  %2428 = vmatprep.subr.mxu1 %v4865_v13  ;;  %v4874_v60 = vld [vmem:[#allocation10_spill] sm:$0xff] }
 0x1bc   :  { %2358 = vmatpush1.msra.mxu0 %v4866_v9  ;;  %2429 = vmatpush1.msra.mxu1 %v4867_v10  ;;  %v4875_v9 = vld [vmem:[#allocation31_spill] sm:$0xff] }
 0x1bd   :  { %2359 = vmatprep.subr.mxu0 %v4868_v57  ;;  %2430 = vmatprep.subr.mxu1 %v4869_v51  ;;  %v791_v13 = vadd.f32 %v4875_v9, %v4344_v48  ;;  %v4876_v57 = vld [vmem:[#allocation32_spill] sm:$0xff]  ;;  %v4878_v9 = vld [vmem:[#allocation34_spill] sm:$0xff] }
 0x1be   :  { %2360 = vmatpush1.msra.mxu0 %v4870_v33  ;;  %2393 = vmatprep.mubr.f32.mxu0 %v4871_v62  ;;  %v792_v51 = vadd.f32 %v4876_v57, %v4341_v6  ;;  %v794_v48 = vadd.f32 %v4878_v9, %v4355_v0 }
 0x1bf   :  { %2431 = vmatpush1.msra.mxu1 %v4872_v50  ;;  %2464 = vmatprep.mubr.f32.mxu1 %v4871_v62  ;;  %v793_v50 = vadd.f32 %v4877_v52, %v4350_v12 }
 0x1c0   :  { %2497 = vmatprep.subr.mxu0 %v4873_v8  ;;  %2568 = vmatprep.subr.mxu1 %v4874_v60 }
 0x25f   :  { %v2227_v10 = vpop.f32.mrf.mxu0  ;;  %v2298_v54 = vpop.f32.mrf.mxu1 }
 0x260   :  { %v2303_v39 = vadd.f32 %v2227_v10, %v791_v13  ;;  %v2305_v62 = vadd.f32 %v2298_v54, %v793_v50 }
 0x261   :  { %v2229_v33 = vpop.f32.mrf.mxu0  ;;  %v2300_v60 = vpop.f32.mrf.mxu1 }
 0x262   :  { %v2307_v58 = vmul.f32 0.5, %v2303_v39  ;;  %v2304_v49 = vadd.f32 %v2229_v33, %v792_v51  ;;  %v2306_v10 = vadd.f32 %v2300_v60, %v794_v48 }
 0x264   :  { %3060 = vtanh.f32 %v2307_v58  ;;  %v2311_v8 = vmul.f32 0.5, %v2304_v49  ;;  %v2316_v13 = vmul.f32 0.5, %v2306_v10  ;;  %v4904_v10 = vld [vmem:[#allocation47_spill] sm:$0xff] }
 0x266   :  { %3062 = vtanh.f32 %v2311_v8 }
 0x267   :  { %3064 = vtanh.f32 %v2305_v62 }
 0x268   :  { %3066 = vtanh.f32 %v2316_v13  ;;  %v4905_v13 = vld [vmem:[#allocation36_spill] sm:$0xff] }
 0x271   :  { %v3061_v31 = vpop.eup %3060 }
 0x272   :  { %v2309_v57 = vmul.f32 0.5, %v3061_v31  ;;  %v4903_v31 = vld [vmem:[#allocation35_spill] sm:$0xff] }
 0x273   :  { %v3063_v6 = vpop.eup %3062 }
 0x274   :  { %v2310_v3 = vadd.f32 0.5, %v2309_v57  ;;  %v2313_v39 = vmul.f32 0.5, %v3063_v6  ;;  %v3065_v5 = vpop.eup %3064  ;;  %v4897_v6 = vld [vmem:[#allocation29_spill] sm:$0xff]  ;;  %v1167_v57 = vadd.f32 %v4905_v13, %v4904_v10 }
 0x275   :  { %v3067_v54 = vpop.eup %3066 }
 0x276   :  { %v2314_v52 = vadd.f32 0.5, %v2313_v39  ;;  %v2321_v51 = vmul.f32 %v3065_v5, %v2310_v3  ;;  %v2318_v33 = vmul.f32 0.5, %v3067_v54  ;;  %v4901_v5 = vld [vmem:[#allocation10_spill] sm:$0xff]  ;;  %v4902_v3 = vld [vmem:[#allocation48_spill] sm:$0xff] }
 0x277   :  { %v1166_v60 = vadd.f32 %v4903_v31, %v4902_v3 }
 0x278   :  { %v2320_v58 = vmul.f32 %v2314_v52, %v4358_v2  ;;  %v2319_v62 = vadd.f32 0.5, %v2318_v33  ;;  %v4898_v2 = vld [vmem:[#allocation17_spill] sm:$0xff] }
 0x27a   :  { %v4436_v49 = vadd.f32 %v2321_v51, %v2320_v58  ;;  %v4906_v58 = vld [vmem:[#allocation37_spill] sm:$0xff] }
 0x27b   :  { %v1168_v54 = vadd.f32 %v4906_v58, %v4350_v12 }
 0x27c   :  { %3068 = vtanh.f32 %v4436_v49 }
 0x289   :  { %v3069_v48 = vpop.eup %3068 }
 0x28a   :  { %v2324_v50 = vmul.f32 %v3069_v48, %v2319_v62 }
 0x28c   :  { %2394 = vmatmul.mubr.f32.vlgmr.msra.gmra.mxu0 %v2324_v50  ;;  %2465 = vmatmul.mubr.f32.vlgmr.msra.gmra.mxu1 %v2324_v50 }
 0x28d   :  { %2498 = vmatpush1.msra.mxu0 %v3811_v14  ;;  %2569 = vmatpush1.msra.mxu1 %v3999_v53  ;;  %v4879_v14 = vld [vmem:[#allocation20_spill] sm:$0xff] }
 0x28e   :  { %2499 = vmatprep.subr.mxu0 %v3818_v15  ;;  %2570 = vmatprep.subr.mxu1 %v4012_v55  ;;  %v4880_v15 = vld [vmem:[#allocation7_spill] sm:$0xff] }
 0x28f   :  { %2500 = vmatpush1.msra.mxu0 %v3826_v16  ;;  %2571 = vmatpush1.msra.mxu1 %v4024_v59  ;;  %v4881_v16 = vld [vmem:[#allocation21_spill] sm:$0xff] }
 0x290   :  { %2501 = vmatprep.subr.mxu0 %v3833_v17  ;;  %2572 = vmatprep.subr.mxu1 %v4036_v61  ;;  %v4882_v17 = vld [vmem:[#allocation8_spill] sm:$0xff] }
 0x291   :  { %2502 = vmatpush1.msra.mxu0 %v3840_v18  ;;  %2573 = vmatpush1.msra.mxu1 %v4048_v63  ;;  %v4883_v18 = vld [vmem:[#allocation22_spill] sm:$0xff] }
 0x292   :  { %2503 = vmatprep.subr.mxu0 %v3847_v19  ;;  %2574 = vmatprep.subr.mxu1 %v4060_v1  ;;  %v4884_v19 = vld [vmem:[#allocation9_spill] sm:$0xff] }
 0x293   :  { %2504 = vmatpush1.msra.mxu0 %v3854_v20  ;;  %2575 = vmatpush1.msra.mxu1 %v4074_v4  ;;  %v4885_v20 = vld [vmem:[#allocation23_spill] sm:$0xff] }
 0x294   :  { %2505 = vmatprep.subr.mxu0 %v3861_v21  ;;  %2576 = vmatprep.subr.mxu1 %v4081_v25  ;;  %v4886_v21 = vld [vmem:[#allocation11_spill] sm:$0xff] }
 0x295   :  { %2506 = vmatpush1.msra.mxu0 %v3868_v22  ;;  %2577 = vmatpush1.msra.mxu1 %v4088_v26  ;;  %v4887_v22 = vld [vmem:[#allocation24_spill] sm:$0xff] }
 0x296   :  { %2507 = vmatprep.subr.mxu0 %v3875_v23  ;;  %2578 = vmatprep.subr.mxu1 %v4095_v27  ;;  %v4888_v23 = vld [vmem:[#allocation12_spill] sm:$0xff] }
 0x297   :  { %2508 = vmatpush1.msra.mxu0 %v3882_v24  ;;  %2579 = vmatpush1.msra.mxu1 %v4101_v28  ;;  %v4889_v24 = vld [vmem:[#allocation25_spill] sm:$0xff] }
 0x298   :  { %2509 = vmatprep.subr.mxu0 %v3892_v32  ;;  %2580 = vmatprep.subr.mxu1 %v4108_v29  ;;  %v4890_v32 = vld [vmem:[#allocation13_spill] sm:$0xff] }
 0x299   :  { %2510 = vmatpush1.msra.mxu0 %v3902_v34  ;;  %2581 = vmatpush1.msra.mxu1 %v4115_v30  ;;  %v4891_v34 = vld [vmem:[#allocation26_spill] sm:$0xff] }
 0x29a   :  { %2511 = vmatprep.subr.mxu0 %v3910_v35  ;;  %2582 = vmatprep.subr.mxu1 %v4122_v41  ;;  %v4892_v35 = vld [vmem:[#allocation14_spill] sm:$0xff] }
 0x29b   :  { %2512 = vmatpush1.msra.mxu0 %v3917_v36  ;;  %2583 = vmatpush1.msra.mxu1 %v4129_v42  ;;  %v4893_v36 = vld [vmem:[#allocation27_spill] sm:$0xff] }
 0x29c   :  { %2513 = vmatprep.subr.mxu0 %v3924_v37  ;;  %2584 = vmatprep.subr.mxu1 %v4136_v43  ;;  %v4894_v37 = vld [vmem:[#allocation15_spill] sm:$0xff] }
 0x29d   :  { %2514 = vmatpush1.msra.mxu0 %v3931_v38  ;;  %2585 = vmatpush1.msra.mxu1 %v4143_v44  ;;  %v4895_v38 = vld [vmem:[#allocation28_spill] sm:$0xff] }
 0x29e   :  { %2515 = vmatprep.subr.mxu0 %v4846_v47  ;;  %2586 = vmatprep.subr.mxu1 %v4150_v46  ;;  %v4899_v47 = vmov 0.0  }
 0x29f   :  { %2516 = vmatpush1.msra.mxu0 %v3945_v40  ;;  %2587 = vmatpush1.msra.mxu1 %v4847_v11  ;;  %v4896_v40 = vld [vmem:[#allocation16_spill] sm:$0xff] }
 0x2a0   :  { %2517 = vmatprep.subr.mxu0 %v4848_v45  ;;  %2588 = vmatprep.subr.mxu1 %v4849_v56  ;;  %v4900_v45 = vld [vmem:[#allocation30_spill] sm:$0xff] }
 0x2a1   :  { %2518 = vmatpush1.msra.mxu0 %v4850_v7  ;;  %2589 = vmatpush1.msra.mxu1 %v4879_v14  ;;  %v3100_v7 = vld [vmem:[%s4731_s5 + $0x1e8] sm:$0xff] }
 0x2a2   :  { %2519 = vmatprep.subr.mxu0 %v4880_v15  ;;  %2590 = vmatprep.subr.mxu1 %v4881_v16  ;;  %v4907_v15 = vld [vmem:[#allocation38_spill] sm:$0xff] }
 0x2a3   :  { %2520 = vmatpush1.msra.mxu0 %v4882_v17  ;;  %2591 = vmatpush1.msra.mxu1 %v4883_v18  ;;  %v1169_v17 = vadd.f32 %v4907_v15, %v4355_v0 }
 0x2a4   :  { %2521 = vmatprep.subr.mxu0 %v4884_v19  ;;  %2592 = vmatprep.subr.mxu1 %v4885_v20 }
 0x2a5   :  { %2522 = vmatpush1.msra.mxu0 %v4886_v21  ;;  %2593 = vmatpush1.msra.mxu1 %v4887_v22 }
 0x2a6   :  { %2523 = vmatprep.subr.mxu0 %v4888_v23  ;;  %2594 = vmatprep.subr.mxu1 %v4889_v24 }
 0x2a7   :  { %2524 = vmatpush1.msra.mxu0 %v4890_v32  ;;  %2595 = vmatpush1.msra.mxu1 %v4891_v34 }
 0x2a8   :  { %2525 = vmatprep.subr.mxu0 %v4892_v35  ;;  %2596 = vmatprep.subr.mxu1 %v4893_v36 }
 0x2a9   :  { %2526 = vmatpush1.msra.mxu0 %v4894_v37  ;;  %2597 = vmatpush1.msra.mxu1 %v4895_v38 }
 0x2aa   :  { %2527 = vmatprep.subr.mxu0 %v4896_v40  ;;  %2598 = vmatprep.subr.mxu1 %v4897_v6 }
 0x2ab   :  { %2528 = vmatpush1.msra.mxu0 %v4898_v2  ;;  %2561 = vmatprep.mubr.f32.mxu0 %v4899_v47 }
 0x2ac   :  { %2599 = vmatpush1.msra.mxu1 %v4900_v45  ;;  %2632 = vmatprep.mubr.f32.mxu1 %v4899_v47 }
 0x2ad   :  { %2665 = vmatprep.subr.mxu0 %v3100_v7  ;;  %2736 = vmatprep.subr.mxu1 %v4901_v5 }
 0x34c   :  { %v2395_v8 = vpop.f32.mrf.mxu0  ;;  %v2466_v39 = vpop.f32.mrf.mxu1 }
 0x34d   :  { %v2471_v9 = vadd.f32 %v2395_v8, %v1166_v60  ;;  %v2473_v62 = vadd.f32 %v2466_v39, %v1168_v54 }
 0x34e   :  { %v2397_v52 = vpop.f32.mrf.mxu0  ;;  %v2468_v50 = vpop.f32.mrf.mxu1 }
 0x34f   :  { %v2475_v51 = vmul.f32 0.5, %v2471_v9  ;;  %v2472_v33 = vadd.f32 %v2397_v52, %v1167_v57  ;;  %v2474_v19 = vadd.f32 %v2468_v50, %v1169_v17  ;;  %v3104_v50 = vld [vmem:[%s4731_s5 + $0x1a8] sm:$0xff]  ;;  %v4911_v17 = vld [vmem:[#allocation42_spill] sm:$0xff] }
 0x351   :  { %3070 = vtanh.f32 %v2475_v51  ;;  %v2479_v48 = vmul.f32 0.5, %v2472_v33  ;;  %v2484_v21 = vmul.f32 0.5, %v2474_v19  ;;  %v1544_v19 = vadd.f32 %v4911_v17, %v4355_v0 }
 0x353   :  { %3072 = vtanh.f32 %v2479_v48  ;;  %v3103_v48 = vld [vmem:[%s4731_s5 + $0x1c0] sm:$0xff] }
 0x354   :  { %3074 = vtanh.f32 %v2473_v62  ;;  %v3101_v62 = vld [vmem:[%s4731_s5 + $0x1e0] sm:$0xff] }
 0x355   :  { %3076 = vtanh.f32 %v2484_v21 }
 0x35e   :  { %v3071_v23 = vpop.eup %3070 }
 0x35f   :  { %v2477_v7 = vmul.f32 0.5, %v3071_v23 }
 0x360   :  { %v3073_v5 = vpop.eup %3072 }
 0x361   :  { %v2478_v31 = vadd.f32 0.5, %v2477_v7  ;;  %v2481_v60 = vmul.f32 0.5, %v3073_v5  ;;  %v3075_v8 = vpop.eup %3074 }
 0x362   :  { %v3077_v52 = vpop.eup %3076 }
 0x363   :  { %v2482_v9 = vadd.f32 0.5, %v2481_v60  ;;  %v2489_v13 = vmul.f32 %v3075_v8, %v2478_v31  ;;  %v2486_v51 = vmul.f32 0.5, %v3077_v52 }
 0x365   :  { %v2488_v57 = vmul.f32 %v2482_v9, %v4436_v49  ;;  %v2487_v58 = vadd.f32 0.5, %v2486_v51  ;;  %v3102_v49 = vld [vmem:[%s4731_s5 + $0x1c8] sm:$0xff] }
 0x367   :  { %v4516_v39 = vadd.f32 %v2489_v13, %v2488_v57 }
 0x369   :  { %3078 = vtanh.f32 %v4516_v39 }
 0x376   :  { %v3079_v54 = vpop.eup %3078 }
 0x377   :  { %v2492_v33 = vmul.f32 %v3079_v54, %v2487_v58 }
 0x379   :  { %2562 = vmatmul.mubr.f32.vlgmr.msra.gmra.mxu0 %v2492_v33  ;;  %2633 = vmatmul.mubr.f32.vlgmr.msra.gmra.mxu1 %v2492_v33 }
 0x37a   :  { %2666 = vmatpush1.msra.mxu0 %v3101_v62  ;;  %2737 = vmatpush1.msra.mxu1 %v3999_v53  ;;  %v3105_v53 = vld [vmem:[%s4731_s5 + $0x1a0] sm:$0xff] }
 0x37b   :  { %2667 = vmatprep.subr.mxu0 %v3102_v49  ;;  %2738 = vmatprep.subr.mxu1 %v4012_v55  ;;  %v3106_v55 = vld [vmem:[%s4731_s5 + $0x188] sm:$0xff] }
 0x37c   :  { %2668 = vmatpush1.msra.mxu0 %v3103_v48  ;;  %2739 = vmatpush1.msra.mxu1 %v4024_v59  ;;  %v3107_v59 = vld [vmem:[%s4731_s5 + $0x180] sm:$0xff]  ;;  %v2844_v48 = vld [vmem:[%s4733_s6 + $0x78] sm:$0xff] }
 0x37d   :  { %2669 = vmatprep.subr.mxu0 %v3104_v50  ;;  %2740 = vmatprep.subr.mxu1 %v4036_v61  ;;  %v3108_v61 = vld [vmem:[%s4731_s5 + $0x168] sm:$0xff] }
 0x37e   :  { %2670 = vmatpush1.msra.mxu0 %v3105_v53  ;;  %2741 = vmatpush1.msra.mxu1 %v4048_v63  ;;  %v3109_v63 = vld [vmem:[%s4731_s5 + $0x160] sm:$0xff]  ;;  %v2842_v50 = vld [vmem:[%s4733_s6 + $0x68] sm:$0xff] }
 0x37f   :  { %2671 = vmatprep.subr.mxu0 %v3106_v55  ;;  %2742 = vmatprep.subr.mxu1 %v4060_v1  ;;  %v3110_v1 = vld [vmem:[%s4731_s5 + $0x148] sm:$0xff]  ;;  %v2841_v53 = vld [vmem:[%s4733_s6 + $0x60] sm:$0xff]  ;;  %v2840_v55 = vld [vmem:[%s4733_s6 + $0x58] sm:$0xff] }
 0x380   :  { %2672 = vmatpush1.msra.mxu0 %v3107_v59  ;;  %2743 = vmatpush1.msra.mxu1 %v4074_v4  ;;  %v3111_v4 = vld [vmem:[%s4731_s5 + $0x140] sm:$0xff]  ;;  %v2839_v59 = vld [vmem:[%s4733_s6 + $0x50] sm:$0xff] }
 0x381   :  { %2673 = vmatprep.subr.mxu0 %v3108_v61  ;;  %2744 = vmatprep.subr.mxu1 %v4081_v25  ;;  %v3112_v25 = vld [vmem:[%s4731_s5 + $0x128] sm:$0xff] }
 0x382   :  { %2674 = vmatpush1.msra.mxu0 %v3109_v63  ;;  %2745 = vmatpush1.msra.mxu1 %v4088_v26  ;;  %v3113_v26 = vld [vmem:[%s4731_s5 + $0x120] sm:$0xff]  ;;  %v2838_v61 = vld [vmem:[%s4733_s6 + $0x48] sm:$0xff] }
 0x383   :  { %2675 = vmatprep.subr.mxu0 %v3110_v1  ;;  %2746 = vmatprep.subr.mxu1 %v4095_v27  ;;  %v3114_v27 = vld [vmem:[%s4731_s5 + $0x108] sm:$0xff]  ;;  %v2837_v63 = vld [vmem:[%s4733_s6 + $0x40] sm:$0xff]  ;;  %v2836_v1 = vld [vmem:[%s4733_s6 + $0x38] sm:$0xff] }
 0x384   :  { %2676 = vmatpush1.msra.mxu0 %v3111_v4  ;;  %2747 = vmatpush1.msra.mxu1 %v4101_v28  ;;  %v3115_v28 = vld [vmem:[%s4731_s5 + $0x100] sm:$0xff]  ;;  %v2835_v4 = vld [vmem:[%s4733_s6 + $0x30] sm:$0xff] }
 0x385   :  { %2677 = vmatprep.subr.mxu0 %v3112_v25  ;;  %2748 = vmatprep.subr.mxu1 %v4108_v29  ;;  %v3116_v29 = vld [vmem:[%s4731_s5 + $0xe8] sm:$0xff] }
 0x386   :  { %2678 = vmatpush1.msra.mxu0 %v3113_v26  ;;  %2749 = vmatpush1.msra.mxu1 %v4115_v30  ;;  %v3117_v30 = vld [vmem:[%s4731_s5 + $0xe0] sm:$0xff]  ;;  %v2834_v25 = vld [vmem:[%s4733_s6 + $0x28] sm:$0xff] }
 0x387   :  { %2679 = vmatprep.subr.mxu0 %v3114_v27  ;;  %2750 = vmatprep.subr.mxu1 %v4122_v41  ;;  %v3118_v41 = vld [vmem:[%s4731_s5 + $0xc8] sm:$0xff]  ;;  %v2833_v26 = vld [vmem:[%s4733_s6 + $0x20] sm:$0xff]  ;;  %v2832_v27 = vld [vmem:[%s4733_s6 + $0x18] sm:$0xff] }
 0x388   :  { %2680 = vmatpush1.msra.mxu0 %v3115_v28  ;;  %2751 = vmatpush1.msra.mxu1 %v4129_v42  ;;  %v3119_v42 = vld [vmem:[%s4731_s5 + $0xc0] sm:$0xff]  ;;  %v2831_v28 = vld [vmem:[%s4733_s6 + $0x10] sm:$0xff] }
 0x389   :  { %2681 = vmatprep.subr.mxu0 %v3116_v29  ;;  %2752 = vmatprep.subr.mxu1 %v4136_v43  ;;  %v3120_v43 = vld [vmem:[%s4731_s5 + $0xa8] sm:$0xff] }
 0x38a   :  { %2682 = vmatpush1.msra.mxu0 %v3117_v30  ;;  %2753 = vmatpush1.msra.mxu1 %v4143_v44  ;;  %v3121_v44 = vld [vmem:[%s4731_s5 + $0xa0] sm:$0xff]  ;;  %v2830_v29 = vld [vmem:[%s4733_s6 + $0x8] sm:$0xff] }
 0x38b   :  { %2683 = vmatprep.subr.mxu0 %v3118_v41  ;;  %2754 = vmatprep.subr.mxu1 %v4150_v46  ;;  %v3122_v46 = vld [vmem:[%s4731_s5 + $0x88] sm:$0xff]  ;;  %v2829_v30 = vld [vmem:[%s4733_s6] sm:$0xff] }
 0x38c   :  { %2684 = vmatpush1.msra.mxu0 %v3119_v42  ;;  %2755 = vmatpush1.msra.mxu1 %v4847_v11  ;;  %v3123_v11 = vld [vmem:[%s4731_s5 + $0x80] sm:$0xff] }
 0x38d   :  { %2685 = vmatprep.subr.mxu0 %v3120_v43  ;;  %2756 = vmatprep.subr.mxu1 %v4849_v56  ;;  %v3124_v56 = vld [vmem:[%s4731_s5 + $0x68] sm:$0xff]  ;;  %v4912_v41 = vld [vmem:[#allocation43_spill] sm:$0xff] }
 0x38e   :  { %2686 = vmatpush1.msra.mxu0 %v3121_v44  ;;  %2757 = vmatpush1.msra.mxu1 %v4879_v14  ;;  %v3125_v14 = vld [vmem:[%s4731_s5 + $0x60] sm:$0xff]  ;;  %v1916_v42 = vadd.f32 %v4912_v41, %v4902_v3 }
 0x38f   :  { %2687 = vmatprep.subr.mxu0 %v3122_v46  ;;  %2758 = vmatprep.subr.mxu1 %v4881_v16  ;;  %v3126_v16 = vld [vmem:[%s4731_s5 + $0x48] sm:$0xff] }
 0x390   :  { %2688 = vmatpush1.msra.mxu0 %v3123_v11  ;;  %2759 = vmatpush1.msra.mxu1 %v4883_v18  ;;  %v4908_v18 = vld [vmem:[#allocation39_spill] sm:$0xff]  ;;  %v4913_v46 = vld [vmem:[#allocation44_spill] sm:$0xff] }
 0x391   :  { %2689 = vmatprep.subr.mxu0 %v3124_v56  ;;  %2760 = vmatprep.subr.mxu1 %v4885_v20  ;;  %v1541_v20 = vadd.f32 %v4908_v18, %v4902_v3  ;;  %v1917_v11 = vadd.f32 %v4913_v46, %v4904_v10  ;;  %v4914_v18 = vld [vmem:[#allocation45_spill] sm:$0xff]  ;;  %v4915_v3 = vld [vmem:[#allocation46_spill] sm:$0xff] }
 0x392   :  { %2690 = vmatpush1.msra.mxu0 %v3125_v14  ;;  %2761 = vmatpush1.msra.mxu1 %v4887_v22 }
 0x393   :  { %2691 = vmatprep.subr.mxu0 %v3126_v16  ;;  %2762 = vmatprep.subr.mxu1 %v4889_v24 }
 0x394   :  { %2692 = vmatpush1.msra.mxu0 %v4890_v32  ;;  %2763 = vmatpush1.msra.mxu1 %v4891_v34  ;;  %v4909_v32 = vld [vmem:[#allocation40_spill] sm:$0xff] }
 0x395   :  { %2693 = vmatprep.subr.mxu0 %v4892_v35  ;;  %2764 = vmatprep.subr.mxu1 %v4893_v36  ;;  %v1542_v34 = vadd.f32 %v4909_v32, %v4904_v10 }
 0x396   :  { %2694 = vmatpush1.msra.mxu0 %v4894_v37  ;;  %2765 = vmatpush1.msra.mxu1 %v4895_v38  ;;  %v4910_v38 = vld [vmem:[#allocation41_spill] sm:$0xff] }
 0x397   :  { %2695 = vmatprep.subr.mxu0 %v4896_v40  ;;  %2766 = vmatprep.subr.mxu1 %v4897_v6  ;;  %v1543_v40 = vadd.f32 %v4910_v38, %v4350_v12 }
 0x398   :  { %2696 = vmatpush1.msra.mxu0 %v4898_v2  ;;  %2729 = vmatprep.mubr.f32.mxu0 %v4899_v47 }
 0x399   :  { %2767 = vmatpush1.msra.mxu1 %v4900_v45  ;;  %2800 = vmatprep.mubr.f32.mxu1 %v4899_v47 }
 0x39a   :  { %3013 = vmatprep.subr.mxu0 %v4899_v47 }
 0x439   :  { %v2563_v22 = vpop.f32.mrf.mxu0  ;;  %v2634_v35 = vpop.f32.mrf.mxu1 }
 0x43a   :  { %v2639_v24 = vadd.f32 %v2563_v22, %v1541_v20  ;;  %v2641_v2 = vadd.f32 %v2634_v35, %v1543_v40  ;;  %v1918_v20 = vadd.f32 %v4914_v18, %v4350_v12 }
 0x43b   :  { %v2565_v36 = vpop.f32.mrf.mxu0  ;;  %v2636_v15 = vpop.f32.mrf.mxu1 }
 0x43c   :  { %v2643_v37 = vmul.f32 0.5, %v2639_v24  ;;  %v2640_v6 = vadd.f32 %v2565_v36, %v1542_v34  ;;  %v2642_v21 = vadd.f32 %v2636_v15, %v1544_v19  ;;  %v1919_v34 = vadd.f32 %v4915_v3, %v4355_v0 }
 0x43e   :  { %3080 = vtanh.f32 %v2643_v37  ;;  %v2647_v45 = vmul.f32 0.5, %v2640_v6  ;;  %v2652_v23 = vmul.f32 0.5, %v2642_v21 }
 0x440   :  { %3082 = vtanh.f32 %v2647_v45 }
 0x441   :  { %3084 = vtanh.f32 %v2641_v2 }
 0x442   :  { %3086 = vtanh.f32 %v2652_v23 }
 0x44b   :  { %v3081_v7 = vpop.eup %3080 }
 0x44c   :  { %v2645_v5 = vmul.f32 0.5, %v3081_v7 }
 0x44d   :  { %v3083_v31 = vpop.eup %3082 }
 0x44e   :  { %v2646_v60 = vadd.f32 0.5, %v2645_v5  ;;  %v2649_v8 = vmul.f32 0.5, %v3083_v31  ;;  %v3085_v9 = vpop.eup %3084  ;;  %v2995_v5 = vld [vmem:[%s4734_s7] ss:$0 sm:$0xff] }
 0x44f   :  { %v3087_v58 = vpop.eup %3086 }
 0x450   :  { %v2650_v13 = vadd.f32 0.5, %v2649_v8  ;;  %v2657_v57 = vmul.f32 %v3085_v9, %v2646_v60  ;;  %v2654_v54 = vmul.f32 0.5, %v3087_v58 }
 0x452   :  { %v2656_v52 = vmul.f32 %v2650_v13, %v4516_v39  ;;  %v2655_v33 = vadd.f32 0.5, %v2654_v54  ;;  %v2843_v39 = vld [vmem:[%s4733_s6 + $0x70] sm:$0xff] }
 0x454   :  { %v4645_v51 = vadd.f32 %v2657_v57, %v2656_v52 }
 0x456   :  { %3088 = vtanh.f32 %v4645_v51 }
 0x463   :  { %v3089_v62 = vpop.eup %3088 }
 0x464   :  { %v2660_v49 = vmul.f32 %v3089_v62, %v2655_v33 }
 0x466   :  { %2730 = vmatmul.mubr.f32.vlgmr.msra.gmra.mxu0 %v2660_v49  ;;  %2801 = vmatmul.mubr.f32.vlgmr.msra.gmra.mxu1 %v2660_v49 }
 0x467   :  { %3014 = vmatpush3.msra.mxu0 %v2844_v48  ;;  %3045 = vmatprep.mubr.msk.f32.mxu0 %vm3128_vm2, %v4899_v47 }
 0x468   :  { %3015 = vmatprep.subr.mxu0 %v4899_v47 }
 0x469   :  { %3016 = vmatpush3.msra.mxu0 %v2843_v39 }
 0x46a   :  { %3017 = vmatprep.subr.mxu0 %v4899_v47 }
 0x46b   :  { %3018 = vmatpush3.msra.mxu0 %v2842_v50 }
 0x46c   :  { %3019 = vmatprep.subr.mxu0 %v4899_v47 }
 0x46d   :  { %3020 = vmatpush3.msra.mxu0 %v2841_v53 }
 0x46e   :  { %3021 = vmatprep.subr.mxu0 %v4899_v47 }
 0x46f   :  { %3022 = vmatpush3.msra.mxu0 %v2840_v55 }
 0x470   :  { %3023 = vmatprep.subr.mxu0 %v4899_v47 }
 0x471   :  { %3024 = vmatpush3.msra.mxu0 %v2839_v59 }
 0x472   :  { %3025 = vmatprep.subr.mxu0 %v4899_v47 }
 0x473   :  { %3026 = vmatpush3.msra.mxu0 %v2838_v61 }
 0x474   :  { %3027 = vmatprep.subr.mxu0 %v4899_v47 }
 0x475   :  { %3028 = vmatpush3.msra.mxu0 %v2837_v63 }
 0x476   :  { %3029 = vmatprep.subr.mxu0 %v4899_v47 }
 0x477   :  { %3030 = vmatpush3.msra.mxu0 %v2836_v1 }
 0x478   :  { %3031 = vmatprep.subr.mxu0 %v4899_v47 }
 0x479   :  { %3032 = vmatpush3.msra.mxu0 %v2835_v4 }
 0x47a   :  { %3033 = vmatprep.subr.mxu0 %v4899_v47 }
 0x47b   :  { %3034 = vmatpush3.msra.mxu0 %v2834_v25 }
 0x47c   :  { %3035 = vmatprep.subr.mxu0 %v4899_v47 }
 0x47d   :  { %3036 = vmatpush3.msra.mxu0 %v2833_v26 }
 0x47e   :  { %3037 = vmatprep.subr.mxu0 %v4899_v47 }
 0x47f   :  { %3038 = vmatpush3.msra.mxu0 %v2832_v27 }
 0x480   :  { %3039 = vmatprep.subr.mxu0 %v4899_v47 }
 0x481   :  { %3040 = vmatpush3.msra.mxu0 %v2831_v28 }
 0x482   :  { %3041 = vmatprep.subr.mxu0 %v4899_v47 }
 0x483   :  { %3042 = vmatpush3.msra.mxu0 %v2830_v29 }
 0x484   :  { %3043 = vmatprep.subr.mxu0 %v4899_v47 }
 0x485   :  { %3044 = vmatpush3.msra.mxu0 %v2829_v30 }
 0x526   :  { %v2731_v43 = vpop.f32.mrf.mxu0  ;;  %v2802_v56 = vpop.f32.mrf.mxu1 }
 0x527   :  { %v2807_v44 = vadd.f32 %v2731_v43, %v1916_v42  ;;  %v2809_v24 = vadd.f32 %v2802_v56, %v1918_v20 }
 0x528   :  { %v2733_v14 = vpop.f32.mrf.mxu0  ;;  %v2804_v47 = vpop.f32.mrf.mxu1 }
 0x529   :  { %v2811_v16 = vmul.f32 0.5, %v2807_v44  ;;  %v2808_v22 = vadd.f32 %v2733_v14, %v1917_v11  ;;  %v2810_v35 = vadd.f32 %v2804_v47, %v1919_v34 }
 0x52b   :  { %3090 = vtanh.f32 %v2811_v16  ;;  %v2815_v32 = vmul.f32 0.5, %v2808_v22  ;;  %v2820_v36 = vmul.f32 0.5, %v2810_v35 }
 0x52d   :  { %3092 = vtanh.f32 %v2815_v32 }
 0x52e   :  { %3094 = vtanh.f32 %v2809_v24 }
 0x52f   :  { %3096 = vtanh.f32 %v2820_v36 }
 0x538   :  { %v3091_v37 = vpop.eup %3090 }
 0x539   :  { %v2813_v10 = vmul.f32 0.5, %v3091_v37 }
 0x53a   :  { %v3093_v38 = vpop.eup %3092 }
 0x53b   :  { %v2814_v40 = vadd.f32 0.5, %v2813_v10  ;;  %v2817_v6 = vmul.f32 0.5, %v3093_v38  ;;  %v3095_v2 = vpop.eup %3094 }
 0x53c   :  { %v3097_v19 = vpop.eup %3096 }
 0x53d   :  { %v2818_v12 = vadd.f32 0.5, %v2817_v6  ;;  %v2825_v45 = vmul.f32 %v3095_v2, %v2814_v40  ;;  %v2822_v21 = vmul.f32 0.5, %v3097_v19 }
 0x53f   :  { %v2824_v15 = vmul.f32 %v2818_v12, %v4645_v51  ;;  %v2823_v23 = vadd.f32 0.5, %v2822_v21 }
 0x541   :  { %v2826_v17 = vadd.f32 %v2825_v45, %v2824_v15 }
 0x543   :  { %3098 = vtanh.f32 %v2826_v17 }
 0x550   :  { %v3099_v7 = vpop.eup %3098 }
 0x551   :  { %v2828_v0 = vmul.f32 %v3099_v7, %v2823_v23 }
 0x553   :  { %3046 = vmatmul.mubr.f32.vlgmr.msra.gmra.mxu0 %v2828_v0 }
 0x613   :  { %v2918_v31 = vpop.f32.mrf.mxu0 }
 0x614   :  { %v2919_v60 = vadd.f32 %v2995_v5, %v2918_v31 }
 0x615   :  { %v3047_v8 = vpop.f32.mrf.mxu0 }
 0x616   :  { %2922 = vst [vmem:[%s4735_s8] sm:$0xff] %v2919_v60 }

</bundles_post_ra>
